<compile_context>
chip_gen: v7x
topology: tpu7x:2x2x1
jax: 0.10.0
libtpu: 0.0.40
codegen_flags: <defaults>
</compile_context>

<pallas_src>
import functools

import jax
import jax.numpy as jnp
from jax import lax
from jax.experimental import pallas as pl
from jax.experimental.pallas import tpu as pltpu


def get_padding(kernel_size, dilation=1):
    return int((kernel_size * dilation - dilation) / 2)


def _round_up(x, m):
    return ((x + m - 1) // m) * m


# ----------------------------------------------------------------------------
# Fused kernel: snake1 -> conv1(dilated, reflect) -> mask -> snake2 ->
#               conv2(reflect) -> mask -> + residual, for one (batch, T-tile).
# ----------------------------------------------------------------------------
def _fused_residual_block_kernel(
        len_ref,                                      # scalar prefetch (SMEM), (B,)
        x0_ref, x1_ref,                               # padded input: block t, block t+1
        alpha1_ref, inv_beta1_ref, w1_ref, b1_ref,    # stage-1 params
        alpha2_ref, inv_beta2_ref, w2_ref, b2_ref,    # stage-2 params
        out_ref,
        *, kernel_size, dilation, tile_t, pad1, pad2, seq_len):
    K = kernel_size
    H = pad1 + pad2
    W1 = tile_t + 2 * H        # input window feeding conv1
    W2 = tile_t + 2 * pad2     # extended y1 / a2 width feeding conv2

    b = pl.program_id(0)
    t = pl.program_id(1)
    length = len_ref[b]

    # Input window = this tile + halo lanes taken from the neighbouring block.
    x0 = x0_ref[0]                                           # (C_in, tile_t)
    if H > 0:
        x_win = jnp.concatenate([x0, x1_ref[0][:, :2 * H]], axis=-1)  # (C_in, W1)
    else:
        x_win = x0

    # Global time positions of the extended columns; computed once and shared
    # by the y1 mask, the reflect fixups and the output mask.
    lane = lax.broadcasted_iota(jnp.int32, (1, W2), 1)
    g_ext = lane + (t * tile_t - pad2)                        # (1, W2)

    # ---- stage 1: SnakeBeta (per-channel, logscale) ----
    a1 = x_win + inv_beta1_ref[...] * jnp.square(jnp.sin(alpha1_ref[...] * x_win))

    # ---- conv1 (dilated) as ONE deep-contraction MXU matmul (im2col) ----
    a1_taps = jnp.concatenate(
        [a1[:, k * dilation:k * dilation + W2] for k in range(K)], axis=0)
    y1 = jnp.dot(w1_ref[...], a1_taps, preferred_element_type=jnp.float32)
    y1 = y1 + b1_ref[...]                                     # (F, W2)

    # mask_sequence_tensor(y1, input_len)
    y1 = jnp.where(g_ext < length, y1, 0.0)

    # ---- stage 2: SnakeBeta on the masked conv1 output ----
    a2 = y1 + inv_beta2_ref[...] * jnp.square(jnp.sin(alpha2_ref[...] * y1))

    # In-kernel reflect padding of a2 at the *global* sequence boundaries
    # (conv2 uses reflect padding of width pad2).  Only tiles containing the
    # boundary columns match these masks; elsewhere this is a no-op.
    for m in range(1, pad2 + 1):
        src = jnp.sum(jnp.where(g_ext == m, a2, 0.0), axis=-1, keepdims=True)
        a2 = jnp.where(g_ext == -m, src, a2)
    for m in range(1, pad2 + 1):
        src = jnp.sum(jnp.where(g_ext == seq_len - 1 - m, a2, 0.0),
                      axis=-1, keepdims=True)
        a2 = jnp.where(g_ext == seq_len - 1 + m, src, a2)

    # ---- conv2 (dilation 1) as ONE deep-contraction MXU matmul (im2col) ----
    a2_taps = jnp.concatenate([a2[:, k:k + tile_t] for k in range(K)], axis=0)
    res = jnp.dot(w2_ref[...], a2_taps, preferred_element_type=jnp.float32)
    res = res + b2_ref[...]                                   # (C, tile_t)

    # mask conv2 output, then residual add (residual slice reused from x_win).
    g_out = g_ext[:, pad2:pad2 + tile_t]
    res = jnp.where(g_out < length, res, 0.0)
    out_ref[0] = (x_win[:, H:H + tile_t] + res).astype(out_ref.dtype)


# ----------------------------------------------------------------------------
# Wrapper: single reflect+align pad of the input, weight packing, pallas_call.
# ----------------------------------------------------------------------------
def residual_block_forward(inputs, input_len, params, *, kernel_size, dilation,
                           tile_t=512):
    B, C, T = inputs.shape
    K = kernel_size
    F = params["w1"].shape[0]
    pad1 = get_padding(K, dilation)
    pad2 = get_padding(K, 1)
    # "same"-length conv requires symmetric padding (odd kernels in BigVGAN).
    assert 2 * pad1 == (K - 1) * dilation and 2 * pad2 == (K - 1)
    H = pad1 + pad2
    assert H < T, "reflect padding requires T > combined halo"

    TT = min(_round_up(tile_t, 128), _round_up(T, 128))
    TT = max(TT, _round_up(2 * H, 128))        # halo must fit in one neighbour block
    nt = -(-T // TT)

    # One reflect pad of the input (covers both stages' halo) + right zero-pad
    # so every (block t, block t+1) pair is in bounds of the block grid.
    x_pad = jnp.pad(inputs, ((0, 0), (0, 0), (H, H)), mode="reflect")
    x_pad = jnp.pad(x_pad, ((0, 0), (0, 0), (0, (nt + 1) * TT - (T + 2 * H))))

    # Fuse the K taps into the contraction dim: (C_out, C_in, K) -> (C_out, K*C_in).
    w1_packed = jnp.transpose(params["w1"], (0, 2, 1)).reshape(F, K * C)
    w2_packed = jnp.transpose(params["w2"], (0, 2, 1)).reshape(C, K * F)

    kernel = functools.partial(
        _fused_residual_block_kernel, kernel_size=K, dilation=dilation,
        tile_t=TT, pad1=pad1, pad2=pad2, seq_len=T)

    grid_spec = pltpu.PrefetchScalarGridSpec(
        num_scalar_prefetch=1,
        grid=(B, nt),
        in_specs=[
            pl.BlockSpec((1, C, TT), lambda b, t, L: (b, 0, t)),        # tile
            pl.BlockSpec((1, C, TT), lambda b, t, L: (b, 0, t + 1)),    # halo src
            pl.BlockSpec((C, 1), lambda b, t, L: (0, 0)),               # alpha1
            pl.BlockSpec((C, 1), lambda b, t, L: (0, 0)),               # inv_beta1
            pl.BlockSpec((F, K * C), lambda b, t, L: (0, 0)),           # w1 packed
            pl.BlockSpec((F, 1), lambda b, t, L: (0, 0)),               # b1
            pl.BlockSpec((F, 1), lambda b, t, L: (0, 0)),               # alpha2
            pl.BlockSpec((F, 1), lambda b, t, L: (0, 0)),               # inv_beta2
            pl.BlockSpec((C, K * F), lambda b, t, L: (0, 0)),           # w2 packed
            pl.BlockSpec((C, 1), lambda b, t, L: (0, 0)),               # b2
        ],
        out_specs=pl.BlockSpec((1, C, TT), lambda b, t, L: (b, 0, t)),
    )

    cost = pl.CostEstimate(
        flops=4 * B * T * C * F * K,
        transcendentals=B * T * (C + F),
        bytes_accessed=4 * B * T * (3 * C + F),
    )

    out = pl.pallas_call(
        kernel,
        out_shape=jax.ShapeDtypeStruct((B, C, nt * TT), inputs.dtype),
        grid_spec=grid_spec,
        compiler_params=pltpu.CompilerParams(
            dimension_semantics=("parallel", "parallel"),
            vmem_limit_bytes=64 * 1024 * 1024),
        cost_estimate=cost,
    )(input_len, x_pad, x_pad,
      params["alpha1"], params["inv_beta1"], w1_packed, params["b1"],
      params["alpha2"], params["inv_beta2"], w2_packed, params["b2"])

    return out[:, :, :T]


# ----------------------------------------------------------------------------
# Pure-JAX reference (for correctness check only).
# ----------------------------------------------------------------------------
def _snakebeta_ref(x, alpha_log, beta_log):
    alpha = jnp.exp(alpha_log)[None, :, None]
    beta = jnp.exp(beta_log)[None, :, None]
    return x + (1.0 / (beta + 1e-9)) * jnp.sin(alpha * x) ** 2


def _conv1d_reflect_ref(x, w, b, dilation, pad):
    x_pad = jnp.pad(x, ((0, 0), (0, 0), (pad, pad)), mode="reflect")
    y = lax.conv_general_dilated(x_pad, w, window_strides=(1,),
                                 padding="VALID", rhs_dilation=(dilation,),
                                 dimension_numbers=("NCH", "OIH", "NCH"))
    return y + b[None, :, None]


def _mask_ref(x, lens):
    t = jnp.arange(x.shape[-1])[None, None, :]
    return jnp.where(t < lens[:, None, None], x, 0.0)


def residual_block_reference(inputs, input_len, raw, *, kernel_size, dilation):
    a1 = _snakebeta_ref(inputs, raw["alpha1_log"], raw["beta1_log"])
    y1 = _mask_ref(_conv1d_reflect_ref(a1, raw["w1"], raw["b1"], dilation,
                                       get_padding(kernel_size, dilation)),
                   input_len)
    a2 = _snakebeta_ref(y1, raw["alpha2_log"], raw["beta2_log"])
    res = _mask_ref(_conv1d_reflect_ref(a2, raw["w2"], raw["b2"], 1,
                                        get_padding(kernel_size, 1)),
                    input_len)
    return inputs + res


# ----------------------------------------------------------------------------
# Test harness.
# ----------------------------------------------------------------------------
def _make_case(seed, B, C, filters, kernel_size, T, lens):
    key = jax.random.PRNGKey(seed)
    ks = jax.random.split(key, 9)
    inputs = jax.random.normal(ks[0], (B, C, T), dtype=jnp.float32)
    input_len = jnp.array(lens, dtype=jnp.int32)

    alpha1_log = 0.1 * jax.random.normal(ks[1], (C,), jnp.float32)
    beta1_log = 0.1 * jax.random.normal(ks[2], (C,), jnp.float32)
    alpha2_log = 0.1 * jax.random.normal(ks[3], (filters,), jnp.float32)
    beta2_log = 0.1 * jax.random.normal(ks[4], (filters,), jnp.float32)

    # weight_norm conv parameters: w = g * v / ||v||  (norm over (in, k) dims).
    v1 = 0.3 * jax.random.normal(ks[5], (filters, C, kernel_size), jnp.float32)
    g1 = jnp.sqrt(jnp.sum(v1 ** 2, axis=(1, 2), keepdims=True)) + 0.1
    w1 = g1 * v1 / jnp.sqrt(jnp.sum(v1 ** 2, axis=(1, 2), keepdims=True))
    b1 = 0.1 * jax.random.normal(ks[6], (filters,), jnp.float32)

    v2 = 0.3 * jax.random.normal(ks[7], (C, filters, kernel_size), jnp.float32)
    g2 = jnp.sqrt(jnp.sum(v2 ** 2, axis=(1, 2), keepdims=True)) + 0.1
    w2 = g2 * v2 / jnp.sqrt(jnp.sum(v2 ** 2, axis=(1, 2), keepdims=True))
    b2 = 0.1 * jax.random.normal(ks[8], (C,), jnp.float32)

    params = {
        "alpha1": jnp.exp(alpha1_log)[:, None],
        "inv_beta1": (1.0 / (jnp.exp(beta1_log) + 1e-9))[:, None],
        "w1": w1, "b1": b1[:, None],
        "alpha2": jnp.exp(alpha2_log)[:, None],
        "inv_beta2": (1.0 / (jnp.exp(beta2_log) + 1e-9))[:, None],
        "w2": w2, "b2": b2[:, None],
    }
    raw = {
        "alpha1_log": alpha1_log, "beta1_log": beta1_log,
        "alpha2_log": alpha2_log, "beta2_log": beta2_log,
        "w1": w1, "b1": b1, "w2": w2, "b2": b2,
    }
    return inputs, input_len, params, raw


if __name__ == "__main__":
    # Case 1: small shapes consistent with the module (single time tile).
    B, C, F, K, D, T = 2, 4, 8, 3, 1, 16
    inputs, input_len, params, raw = _make_case(0, B, C, F, K, T, [T, 11])
    out = residual_block_forward(inputs, input_len, params,
                                 kernel_size=K, dilation=D)
    out = jax.block_until_ready(out)
    ref = residual_block_reference(inputs, input_len, raw,
                                   kernel_size=K, dilation=D)
    assert out.shape == (B, C, T)
    assert jnp.allclose(out, ref, atol=1e-4, rtol=1e-4), (
        float(jnp.max(jnp.abs(out - ref))))

    # Case 2: dilation > 1 and multiple time tiles (forces the halo / in-kernel
    # reflect / cross-tile paths).
    B, C, F, K, D, T = 2, 4, 8, 3, 3, 300
    inputs, input_len, params, raw = _make_case(1, B, C, F, K, T, [300, 200])
    out = residual_block_forward(inputs, input_len, params,
                                 kernel_size=K, dilation=D, tile_t=128)
    out = jax.block_until_ready(out)
    ref = residual_block_reference(inputs, input_len, raw,
                                   kernel_size=K, dilation=D)
    assert out.shape == (B, C, T)
    assert jnp.allclose(out, ref, atol=1e-4, rtol=1e-4), (
        float(jnp.max(jnp.abs(out - ref))))

    print("KERNEL_OK")
</pallas_src>

<mosaic_0001>
module attributes {stable_mosaic.version = 11 : i64} {
  func.func @_fused_residual_block_kernel(%arg0: i32, %arg1: i32, %arg2: memref<2xi32, #tpu.memory_space<smem>>, %arg3: memref<1x4x128xf32, #tpu.memory_space<vmem>>, %arg4: memref<1x4x128xf32, #tpu.memory_space<vmem>>, %arg5: memref<4x1xf32, #tpu.memory_space<vmem>>, %arg6: memref<4x1xf32, #tpu.memory_space<vmem>>, %arg7: memref<8x12xf32, #tpu.memory_space<vmem>>, %arg8: memref<8x1xf32, #tpu.memory_space<vmem>>, %arg9: memref<8x1xf32, #tpu.memory_space<vmem>>, %arg10: memref<8x1xf32, #tpu.memory_space<vmem>>, %arg11: memref<4x24xf32, #tpu.memory_space<vmem>>, %arg12: memref<4x1xf32, #tpu.memory_space<vmem>>, %arg13: memref<1x4x128xf32, #tpu.memory_space<vmem>>) attributes {dimension_semantics = [#tpu.dimension_semantics<parallel>, #tpu.dimension_semantics<parallel>], iteration_bounds = array<i64: 2, 1>, scalar_prefetch = 1 : i64, scratch_operands = 0 : i64, tpu.core_type = #tpu.core_type<tc>, window_params = [{transform_indices = @transform_0, window_bounds = array<i64: 1, 4, 128>}, {transform_indices = @transform_1, window_bounds = array<i64: 1, 4, 128>}, {pipeline_mode = #tpu.pipeline_mode<synchronous>, transform_indices = @transform_2, window_bounds = array<i64: 4, 1>}, {pipeline_mode = #tpu.pipeline_mode<synchronous>, transform_indices = @transform_3, window_bounds = array<i64: 4, 1>}, {pipeline_mode = #tpu.pipeline_mode<synchronous>, transform_indices = @transform_4, window_bounds = array<i64: 8, 12>}, {pipeline_mode = #tpu.pipeline_mode<synchronous>, transform_indices = @transform_5, window_bounds = array<i64: 8, 1>}, {pipeline_mode = #tpu.pipeline_mode<synchronous>, transform_indices = @transform_6, window_bounds = array<i64: 8, 1>}, {pipeline_mode = #tpu.pipeline_mode<synchronous>, transform_indices = @transform_7, window_bounds = array<i64: 8, 1>}, {pipeline_mode = #tpu.pipeline_mode<synchronous>, transform_indices = @transform_8, window_bounds = array<i64: 4, 24>}, {pipeline_mode = #tpu.pipeline_mode<synchronous>, transform_indices = @transform_9, window_bounds = array<i64: 4, 1>}, {transform_indices = @transform_10, window_bounds = array<i64: 1, 4, 128>}]} {
    %0 = arith.index_cast %arg0 : i32 to index
    %1 = memref.load %arg2[%0] : memref<2xi32, #tpu.memory_space<smem>>
    %c0 = arith.constant 0 : index
    %c0_0 = arith.constant 0 : index
    %c0_1 = arith.constant 0 : index
    %2 = vector.load %arg3[%c0, %c0_0, %c0_1] : memref<1x4x128xf32, #tpu.memory_space<vmem>>, vector<1x4x128xf32>
    %3 = vector.shape_cast %2 : vector<1x4x128xf32> to vector<4x128xf32>
    %c0_2 = arith.constant 0 : index
    %c0_3 = arith.constant 0 : index
    %c0_4 = arith.constant 0 : index
    %4 = vector.load %arg4[%c0_2, %c0_3, %c0_4] : memref<1x4x128xf32, #tpu.memory_space<vmem>>, vector<1x4x128xf32>
    %5 = vector.shape_cast %4 : vector<1x4x128xf32> to vector<4x128xf32>
    %6 = vector.extract_strided_slice %5 {offsets = [0, 0], sizes = [4, 4], strides = [1, 1]} : vector<4x128xf32> to vector<4x4xf32>
    %7 = tpu.concatenate %3, %6 in 1 : vector<4x128xf32>, vector<4x4xf32> -> vector<4x132xf32>
    %8 = tpu.iota {dimensions = array<i32: 1>} : vector<1x130xi32>
    %c128_i32 = arith.constant 128 : i32
    %9 = arith.muli %arg1, %c128_i32 : i32
    %c1_i32 = arith.constant 1 : i32
    %10 = arith.subi %9, %c1_i32 : i32
    %11 = vector.broadcast %10 : i32 to vector<1x130xi32>
    %12 = arith.addi %8, %11 : vector<1x130xi32>
    %c0_5 = arith.constant 0 : index
    %c0_6 = arith.constant 0 : index
    %13 = vector.load %arg6[%c0_5, %c0_6] : memref<4x1xf32, #tpu.memory_space<vmem>>, vector<4x1xf32>
    %c0_7 = arith.constant 0 : index
    %c0_8 = arith.constant 0 : index
    %14 = vector.load %arg5[%c0_7, %c0_8] : memref<4x1xf32, #tpu.memory_space<vmem>>, vector<4x1xf32>
    %15 = vector.broadcast %14 : vector<4x1xf32> to vector<4x132xf32>
    %16 = arith.mulf %15, %7 : vector<4x132xf32>
    %17 = math.sin %16 : vector<4x132xf32>
    %18 = arith.mulf %17, %17 : vector<4x132xf32>
    %19 = vector.broadcast %13 : vector<4x1xf32> to vector<4x132xf32>
    %20 = arith.mulf %19, %18 : vector<4x132xf32>
    %21 = arith.addf %7, %20 : vector<4x132xf32>
    %22 = vector.extract_strided_slice %21 {offsets = [0, 0], sizes = [4, 130], strides = [1, 1]} : vector<4x132xf32> to vector<4x130xf32>
    %23 = vector.extract_strided_slice %21 {offsets = [0, 1], sizes = [4, 130], strides = [1, 1]} : vector<4x132xf32> to vector<4x130xf32>
    %24 = vector.extract_strided_slice %21 {offsets = [0, 2], sizes = [4, 130], strides = [1, 1]} : vector<4x132xf32> to vector<4x130xf32>
    %25 = tpu.concatenate %22, %23, %24 in 0 : vector<4x130xf32>, vector<4x130xf32>, vector<4x130xf32> -> vector<12x130xf32>
    %c0_9 = arith.constant 0 : index
    %c0_10 = arith.constant 0 : index
    %26 = vector.load %arg7[%c0_9, %c0_10] : memref<8x12xf32, #tpu.memory_space<vmem>>, vector<8x12xf32>
    %cst = arith.constant dense<0.000000e+00> : vector<8x130xf32>
    %27 = tpu.matmul %26, %25, %cst {dimension_numbers = #tpu.dot_dimension_numbers<[1], [0], [0], [1], [0, 0, 1, 1], [], []>} : vector<8x12xf32>, vector<12x130xf32>, vector<8x130xf32> -> vector<8x130xf32>
    %c0_11 = arith.constant 0 : index
    %c0_12 = arith.constant 0 : index
    %28 = vector.load %arg8[%c0_11, %c0_12] : memref<8x1xf32, #tpu.memory_space<vmem>>, vector<8x1xf32>
    %29 = vector.broadcast %28 : vector<8x1xf32> to vector<8x130xf32>
    %30 = arith.addf %27, %29 : vector<8x130xf32>
    %31 = vector.broadcast %1 : i32 to vector<1x130xi32>
    %32 = arith.cmpi slt, %12, %31 : vector<1x130xi32>
    %cst_13 = arith.constant 0.000000e+00 : f32
    %33 = vector.shape_cast %32 : vector<1x130xi1> to vector<1x130xi1>
    %34 = vector.broadcast %33 : vector<1x130xi1> to vector<8x130xi1>
    %35 = vector.broadcast %cst_13 : f32 to vector<8x130xf32>
    %36 = arith.select %34, %30, %35 : vector<8x130xi1>, vector<8x130xf32>
    %c0_14 = arith.constant 0 : index
    %c0_15 = arith.constant 0 : index
    %37 = vector.load %arg10[%c0_14, %c0_15] : memref<8x1xf32, #tpu.memory_space<vmem>>, vector<8x1xf32>
    %c0_16 = arith.constant 0 : index
    %c0_17 = arith.constant 0 : index
    %38 = vector.load %arg9[%c0_16, %c0_17] : memref<8x1xf32, #tpu.memory_space<vmem>>, vector<8x1xf32>
    %39 = vector.broadcast %38 : vector<8x1xf32> to vector<8x130xf32>
    %40 = arith.mulf %39, %36 : vector<8x130xf32>
    %41 = math.sin %40 : vector<8x130xf32>
    %42 = arith.mulf %41, %41 : vector<8x130xf32>
    %43 = vector.broadcast %37 : vector<8x1xf32> to vector<8x130xf32>
    %44 = arith.mulf %43, %42 : vector<8x130xf32>
    %45 = arith.addf %36, %44 : vector<8x130xf32>
    %c1_i32_18 = arith.constant 1 : i32
    %46 = vector.broadcast %c1_i32_18 : i32 to vector<1x130xi32>
    %47 = arith.cmpi eq, %12, %46 : vector<1x130xi32>
    %cst_19 = arith.constant 0.000000e+00 : f32
    %48 = vector.shape_cast %47 : vector<1x130xi1> to vector<1x130xi1>
    %49 = vector.broadcast %48 : vector<1x130xi1> to vector<8x130xi1>
    %50 = vector.broadcast %cst_19 : f32 to vector<8x130xf32>
    %51 = arith.select %49, %45, %50 : vector<8x130xi1>, vector<8x130xf32>
    %cst_20 = arith.constant dense<0.000000e+00> : vector<8xf32>
    %52 = vector.multi_reduction <add>, %51, %cst_20 [1] : vector<8x130xf32> to vector<8xf32>
    %53 = vector.shape_cast %52 : vector<8xf32> to vector<8x1xf32>
    %c-1_i32 = arith.constant -1 : i32
    %54 = vector.broadcast %c-1_i32 : i32 to vector<1x130xi32>
    %55 = arith.cmpi eq, %12, %54 : vector<1x130xi32>
    %56 = vector.shape_cast %55 : vector<1x130xi1> to vector<1x130xi1>
    %57 = vector.broadcast %56 : vector<1x130xi1> to vector<8x130xi1>
    %58 = vector.shape_cast %53 : vector<8x1xf32> to vector<8x1xf32>
    %59 = vector.broadcast %58 : vector<8x1xf32> to vector<8x130xf32>
    %60 = arith.select %57, %59, %45 : vector<8x130xi1>, vector<8x130xf32>
    %c14_i32 = arith.constant 14 : i32
    %61 = vector.broadcast %c14_i32 : i32 to vector<1x130xi32>
    %62 = arith.cmpi eq, %12, %61 : vector<1x130xi32>
    %cst_21 = arith.constant 0.000000e+00 : f32
    %63 = vector.shape_cast %62 : vector<1x130xi1> to vector<1x130xi1>
    %64 = vector.broadcast %63 : vector<1x130xi1> to vector<8x130xi1>
    %65 = vector.broadcast %cst_21 : f32 to vector<8x130xf32>
    %66 = arith.select %64, %60, %65 : vector<8x130xi1>, vector<8x130xf32>
    %cst_22 = arith.constant dense<0.000000e+00> : vector<8xf32>
    %67 = vector.multi_reduction <add>, %66, %cst_22 [1] : vector<8x130xf32> to vector<8xf32>
    %68 = vector.shape_cast %67 : vector<8xf32> to vector<8x1xf32>
    %c16_i32 = arith.constant 16 : i32
    %69 = vector.broadcast %c16_i32 : i32 to vector<1x130xi32>
    %70 = arith.cmpi eq, %12, %69 : vector<1x130xi32>
    %71 = vector.shape_cast %70 : vector<1x130xi1> to vector<1x130xi1>
    %72 = vector.broadcast %71 : vector<1x130xi1> to vector<8x130xi1>
    %73 = vector.shape_cast %68 : vector<8x1xf32> to vector<8x1xf32>
    %74 = vector.broadcast %73 : vector<8x1xf32> to vector<8x130xf32>
    %75 = arith.select %72, %74, %60 : vector<8x130xi1>, vector<8x130xf32>
    %76 = vector.extract_strided_slice %75 {offsets = [0, 0], sizes = [8, 128], strides = [1, 1]} : vector<8x130xf32> to vector<8x128xf32>
    %77 = vector.extract_strided_slice %75 {offsets = [0, 1], sizes = [8, 128], strides = [1, 1]} : vector<8x130xf32> to vector<8x128xf32>
    %78 = vector.extract_strided_slice %75 {offsets = [0, 2], sizes = [8, 128], strides = [1, 1]} : vector<8x130xf32> to vector<8x128xf32>
    %79 = tpu.concatenate %76, %77, %78 in 0 : vector<8x128xf32>, vector<8x128xf32>, vector<8x128xf32> -> vector<24x128xf32>
    %c0_23 = arith.constant 0 : index
    %c0_24 = arith.constant 0 : index
    %80 = vector.load %arg11[%c0_23, %c0_24] : memref<4x24xf32, #tpu.memory_space<vmem>>, vector<4x24xf32>
    %cst_25 = arith.constant dense<0.000000e+00> : vector<4x128xf32>
    %81 = tpu.matmul %80, %79, %cst_25 {dimension_numbers = #tpu.dot_dimension_numbers<[1], [0], [0], [1], [0, 0, 1, 1], [], []>} : vector<4x24xf32>, vector<24x128xf32>, vector<4x128xf32> -> vector<4x128xf32>
    %c0_26 = arith.constant 0 : index
    %c0_27 = arith.constant 0 : index
    %82 = vector.load %arg12[%c0_26, %c0_27] : memref<4x1xf32, #tpu.memory_space<vmem>>, vector<4x1xf32>
    %83 = vector.broadcast %82 : vector<4x1xf32> to vector<4x128xf32>
    %84 = arith.addf %81, %83 : vector<4x128xf32>
    %85 = vector.extract_strided_slice %12 {offsets = [0, 1], sizes = [1, 128], strides = [1, 1]} : vector<1x130xi32> to vector<1x128xi32>
    %86 = vector.broadcast %1 : i32 to vector<1x128xi32>
    %87 = arith.cmpi slt, %85, %86 : vector<1x128xi32>
    %cst_28 = arith.constant 0.000000e+00 : f32
    %88 = vector.shape_cast %87 : vector<1x128xi1> to vector<1x128xi1>
    %89 = vector.broadcast %88 : vector<1x128xi1> to vector<4x128xi1>
    %90 = vector.broadcast %cst_28 : f32 to vector<4x128xf32>
    %91 = arith.select %89, %84, %90 : vector<4x128xi1>, vector<4x128xf32>
    %92 = vector.extract_strided_slice %7 {offsets = [0, 2], sizes = [4, 128], strides = [1, 1]} : vector<4x132xf32> to vector<4x128xf32>
    %93 = arith.addf %92, %91 : vector<4x128xf32>
    %c0_29 = arith.constant 0 : index
    %c0_30 = arith.constant 0 : index
    %c0_31 = arith.constant 0 : index
    %94 = vector.load %arg13[%c0_29, %c0_30, %c0_31] : memref<1x4x128xf32, #tpu.memory_space<vmem>>, vector<1x4x128xf32>
    %95 = vector.shape_cast %94 : vector<1x4x128xf32> to vector<4x128xf32>
    %96 = vector.shape_cast %93 : vector<4x128xf32> to vector<1x4x128xf32>
    tpu.vector_store %arg13[%c0_29, %c0_30, %c0_31], %96 {strides = array<i32>} : memref<1x4x128xf32, #tpu.memory_space<vmem>>, vector<1x4x128xf32>,
    return
  }
  func.func @transform_0(%arg0: i32, %arg1: i32, %arg2: memref<2xi32, #tpu.memory_space<smem>>) -> (i32, i32, i32) {
    %c0_i32 = arith.constant 0 : i32
    %c0_i32_0 = arith.constant 0 : i32
    return %arg0, %c0_i32, %arg1 : i32, i32, i32
  }
  func.func @transform_1(%arg0: i32, %arg1: i32, %arg2: memref<2xi32, #tpu.memory_space<smem>>) -> (i32, i32, i32) {
    %c1_i32 = arith.constant 1 : i32
    %0 = arith.addi %arg1, %c1_i32 : i32
    %c0_i32 = arith.constant 0 : i32
    %c0_i32_0 = arith.constant 0 : i32
    return %arg0, %c0_i32, %0 : i32, i32, i32
  }
  func.func @transform_2(%arg0: i32, %arg1: i32, %arg2: memref<2xi32, #tpu.memory_space<smem>>) -> (i32, i32) {
    %c0_i32 = arith.constant 0 : i32
    %c0_i32_0 = arith.constant 0 : i32
    %c0_i32_1 = arith.constant 0 : i32
    return %c0_i32, %c0_i32_0 : i32, i32
  }
  func.func @transform_3(%arg0: i32, %arg1: i32, %arg2: memref<2xi32, #tpu.memory_space<smem>>) -> (i32, i32) {
    %c0_i32 = arith.constant 0 : i32
    %c0_i32_0 = arith.constant 0 : i32
    %c0_i32_1 = arith.constant 0 : i32
    return %c0_i32, %c0_i32_0 : i32, i32
  }
  func.func @transform_4(%arg0: i32, %arg1: i32, %arg2: memref<2xi32, #tpu.memory_space<smem>>) -> (i32, i32) {
    %c0_i32 = arith.constant 0 : i32
    %c0_i32_0 = arith.constant 0 : i32
    %c0_i32_1 = arith.constant 0 : i32
    return %c0_i32, %c0_i32_0 : i32, i32
  }
  func.func @transform_5(%arg0: i32, %arg1: i32, %arg2: memref<2xi32, #tpu.memory_space<smem>>) -> (i32, i32) {
    %c0_i32 = arith.constant 0 : i32
    %c0_i32_0 = arith.constant 0 : i32
    %c0_i32_1 = arith.constant 0 : i32
    return %c0_i32, %c0_i32_0 : i32, i32
  }
  func.func @transform_6(%arg0: i32, %arg1: i32, %arg2: memref<2xi32, #tpu.memory_space<smem>>) -> (i32, i32) {
    %c0_i32 = arith.constant 0 : i32
    %c0_i32_0 = arith.constant 0 : i32
    %c0_i32_1 = arith.constant 0 : i32
    return %c0_i32, %c0_i32_0 : i32, i32
  }
  func.func @transform_7(%arg0: i32, %arg1: i32, %arg2: memref<2xi32, #tpu.memory_space<smem>>) -> (i32, i32) {
    %c0_i32 = arith.constant 0 : i32
    %c0_i32_0 = arith.constant 0 : i32
    %c0_i32_1 = arith.constant 0 : i32
    return %c0_i32, %c0_i32_0 : i32, i32
  }
  func.func @transform_8(%arg0: i32, %arg1: i32, %arg2: memref<2xi32, #tpu.memory_space<smem>>) -> (i32, i32) {
    %c0_i32 = arith.constant 0 : i32
    %c0_i32_0 = arith.constant 0 : i32
    %c0_i32_1 = arith.constant 0 : i32
    return %c0_i32, %c0_i32_0 : i32, i32
  }
  func.func @transform_9(%arg0: i32, %arg1: i32, %arg2: memref<2xi32, #tpu.memory_space<smem>>) -> (i32, i32) {
    %c0_i32 = arith.constant 0 : i32
    %c0_i32_0 = arith.constant 0 : i32
    %c0_i32_1 = arith.constant 0 : i32
    return %c0_i32, %c0_i32_0 : i32, i32
  }
  func.func @transform_10(%arg0: i32, %arg1: i32, %arg2: memref<2xi32, #tpu.memory_space<smem>>) -> (i32, i32, i32) {
    %c0_i32 = arith.constant 0 : i32
    %c0_i32_0 = arith.constant 0 : i32
    return %arg0, %c0_i32, %arg1 : i32, i32, i32
  }
}

</mosaic_0001>

<bundles_post_ra>
// kernel: tpu_custom_call.1
= control target key start
LH: loop header
LB: loop body
LE: loop exit
PB: predicated region body
PF: predicated region fallthrough
CT: control target
= control target key end

     0   :  { %s2946_s0 = inlined_call_operand.hbm [shape: s32[2], index: 0, kind: input, shape index: {}]   ;;  %s2947_s1 = inlined_call_operand.hbm [shape: f32[2,4,256], index: 1, kind: input, shape index: {}]   ;;  %s2948_s2 = inlined_call_operand.hbm [shape: f32[2,4,256], index: 2, kind: input, shape index: {}]   ;;  %s2949_s3 = inlined_call_operand.hbm [shape: f32[4,1], index: 3, kind: input, shape index: {}]   ;;  %s2950_s4 = inlined_call_operand.hbm [shape: f32[4,1], index: 4, kind: input, shape index: {}]   ;;  %s2951_s5 = inlined_call_operand.hbm [shape: f32[8,12], index: 5, kind: input, shape index: {}]   ;;  %s2952_s6 = inlined_call_operand.hbm [shape: f32[8,1], index: 6, kind: input, shape index: {}]   ;;  %s2953_s7 = inlined_call_operand.hbm [shape: f32[8,1], index: 7, kind: input, shape index: {}]   ;;  %s2954_s8 = inlined_call_operand.hbm [shape: f32[8,1], index: 8, kind: input, shape index: {}]   ;;  %s2955_s9 = inlined_call_operand.hbm [shape: f32[4,24], index: 9, kind: input, shape index: {}]   ;;  %s2956_s10 = inlined_call_operand.hbm [shape: f32[4,1], index: 10, kind: input, shape index: {}]   ;;  %s2957_s11 = inlined_call_operand.hbm [shape: f32[2,4,128], index: 11, kind: output, shape index: {}]  }
   0x1   :  { %2964 = sst [smem:[#allocation32_spill]] %s2949_s3  ;;  %s1779_s19 = scalar_lea.hbm %s2946_s0, 16 }
   0x2   :  { %2965 = sst [smem:[#allocation33_spill]] %s2950_s4  ;;  %p1780_p0 = scmp.ne.s32.totalorder %s2946_s0, %s1779_s19 }
   0x3   :  { %2966 = sst [smem:[#allocation34_spill]] %s2951_s5  ;;  %p1783_p1 = scmp.lt.u32.totalorder %s1779_s19, %s2946_s0 }
   0x4   :  { %2967 = sst [smem:[#allocation35_spill]] %s2952_s6 }
   0x5   :  { %2968 = sst [smem:[#allocation36_spill]] %s2953_s7  ;;  %p1785_p2 = pnand %p1783_p1, %p1780_p0 }
   0x6   :  { %2969 = sst [smem:[#allocation37_spill]] %s2954_s8 }
   0x7   :  { %2970 = sst [smem:[#allocation38_spill]] %s2955_s9 }
   0x8   :  { %2971 = sst [smem:[#allocation39_spill]] %s2957_s11 }
   0x9   :  { %1788 = shalt.err (!%p1785_p2)  }
   0xa   :  { %s2184_s24 = smov [#allocation3]  }
   0xb   :  { %17 = dma.hbm_to_smem %s2946_s0, 16, %s2184_s24, [#allocation2] }
   0xc   :  { %2126 = dma.done.wait [#allocation2], 16 }
   0xd   :  { %2127 = vsyncadd [#allocation2], 4294967280 }
   0xe   :  { %19 = sfence }
   0xf   :  { %20 = vsyncpa [#allocation5], 0 }
  0x10   :  { %22 = vsyncpa [#allocation5 + $0x1], 0 }
  0x11   :  { %23 = vsyncpa [#allocation8], 0 }
  0x12   :  { %25 = vsyncpa [#allocation8 + $0x1], 0 }
  0x13   :  { %26 = vsyncpa [#allocation11], 0 }
  0x14   :  { %27 = vsyncpa [#allocation14], 0 }
  0x15   :  { %28 = vsyncpa [#allocation17], 0 }
  0x16   :  { %29 = vsyncpa [#allocation20], 0 }
  0x17   :  { %30 = vsyncpa [#allocation6], 0 }
  0x18   :  { %32 = vsyncpa [#allocation6 + $0x1], 0  ;;  %s2282_s27 = smov 0   ;;  %s2284_s28 = smov 0  }
  0x19   :  { %s2286_s29 = smov 0   ;;  %s2288_s0 = smov 0  }
  0x1a   :  { %s2290_s30 = smov 0   ;;  %s2292_s12 = smov 0  }
  0x1b LB: > { %2972 = sst [smem:[#allocation31_spill]] %s2174_s0  ;;  %s2313_s13 = sadd.s32 4294967295, %s2182_s12   ;;  %s2182_s12 = sphi %s2292_s12, %s38_s12   ;;  %s2178_s30 = sphi %s2290_s30, %s3014_s30   ;;  %s2174_s0 = sphi %s2288_s0, %s3013_s0   ;;  %s2170_s29 = sphi %s2286_s29, %s3012_s29   ;;  %s2166_s28 = sphi %s2284_s28, %s3011_s28   ;;  %s2162_s27 = sphi %s2282_s27, %s3010_s27  }
  0x1c   : > { %p1489_p3 = scmp.ge.s32.totalorder %s2182_s12, 1  ;;  %p2958_p4 = scmp.eq.s32.totalorder %s2313_s13, 0 }
  0x1d   : > { %p309_p5 = scmp.lt.s32.totalorder %s2182_s12, 3  ;;  %s2185_s15 = smov [#allocation9]  }
  0x1e   : > { %s322_s16 = sshll.u32 %s2185_s15, 4  ;;  %s2186_s17 = smov [#allocation10]   ;;  %s323_s16 = int_to_ptr.vmem [resolvable:$true] %s322_s16 }
  0x1f   : > { %p2318_p6 = pnand %p1489_p3, %p309_p5  ;;  %s333_s18 = sshll.u32 %s2186_s17, 4  ;;  %s2331_s18 = int_to_ptr.vmem [resolvable:$true] %s333_s18 }
  0x20   : > { %s2187_s20 = smov [#allocation13]   ;;  %s2975_s3 = sld [smem:[#allocation32_spill]] }
  0x21   : > { %s2973_s14 = scalar_select %p2318_p6, 1, 0 }
  0x22   : > { %p1619_p8 = pneg %p2318_p6  ;;  %s355_s21 = sshll.u32 %s2187_s20, 4  ;;  %s2333_s21 = int_to_ptr.vmem [resolvable:$true] %s355_s21 }
  0x24   : > { %p2327_p9 = pnand %p1619_p8, %p2958_p4 }
  0x26   : > { %s1789_s24 = scalar_lea.hbm %s2975_s3, 64  ;;  %p2343_p11 = pneg %p2327_p9 }
  0x27   : > { %p1790_p10 = scmp.ne.s32.totalorder %s2975_s3, %s1789_s24  ;;  %p1796_p0 = scmp.lt.u32.totalorder %s1789_s24, %s2975_s3 }
  0x29   : > { %p1792_p12 = pnand %p2343_p11, %p1790_p10 }
  0x2b   : > { %p1793_p13 = pneg %p1792_p12 }
  0x2d   : > { %p1798_p1 = pnand %p1796_p0, %p1793_p13 }
  0x2f   : > { %1801 = shalt.err (!%p1798_p1)
}
  0x30   : > { %s1802_s22 = scalar_lea.vmem %s323_s16, 64  ;;  %p1810_p8 = scmp.lt.s32.totalorder %s323_s16, %s323_s16 }
  0x31   : > { %p1803_p2 = scmp.ne.s32.totalorder %s323_s16, %s1802_s22  ;;  %p1811_p7 = scmp.lt.s32.totalorder %s1802_s22, %s1802_s22 }
  0x33   : > { %p1805_p3 = pnand %p1803_p2, %p2343_p11  ;;  %p1812_p4 = por %p1811_p7, %p1810_p8 }
  0x35   : > { %p1806_p5 = pneg %p1805_p3 }
  0x37   : > { %p1813_p6 = pnand %p1812_p4, %p1806_p5 }
  0x39   : > { %1816 = shalt.err (!%p1813_p6)
}
  0x3a   : > { %1622 = dma.hbm_to_vmem [thread:$0]  (!%p2327_p9), %s2975_s3, 64, %s323_s16, [#allocation8]  }
  0x3b   : > { %s2977_s4 = sld [smem:[#allocation33_spill]] }
  0x41   : > { %s1817_s17 = scalar_lea.hbm %s2977_s4, 64 }
  0x42   : > { %p1818_p10 = scmp.ne.s32.totalorder %s2977_s4, %s1817_s17  ;;  %p1824_p4 = scmp.lt.u32.totalorder %s1817_s17, %s2977_s4 }
  0x44   : > { %p1820_p12 = pnand %p1818_p10, %p2343_p11 }
  0x46   : > { %p1821_p7 = pneg %p1820_p12 }
  0x48   : > { %p1826_p6 = pnand %p1824_p4, %p1821_p7 }
  0x4a   : > { %1829 = shalt.err (!%p1826_p6)
}
  0x4b   : > { %s1830_s16 = scalar_lea.vmem %s2331_s18, 64  ;;  %p1838_p2 = scmp.lt.s32.totalorder %s2331_s18, %s2331_s18 }
  0x4c   : > { %p1831_p13 = scmp.ne.s32.totalorder %s2331_s18, %s1830_s16  ;;  %p1839_p3 = scmp.lt.s32.totalorder %s1830_s16, %s1830_s16 }
  0x4e   : > { %p1833_p0 = pnand %p1831_p13, %p2343_p11  ;;  %p1840_p5 = por %p1839_p3, %p1838_p2 }
  0x50   : > { %p1834_p1 = pneg %p1833_p0 }
  0x52   : > { %p1841_p8 = pnand %p1840_p5, %p1834_p1 }
  0x54   : > { %1844 = shalt.err (!%p1841_p8)
}
  0x55   : > { %1625 = dma.hbm_to_vmem [thread:$0]  (!%p2327_p9), %s2977_s4, 64, %s2331_s18, [#allocation11]  }
  0x56   : > { %s2978_s6 = sld [smem:[#allocation35_spill]] }
  0x5c   : > { %s1845_s24 = scalar_lea.hbm %s2978_s6, 128 }
  0x5d   : > { %p1846_p10 = scmp.ne.s32.totalorder %s2978_s6, %s1845_s24  ;;  %p1852_p4 = scmp.lt.u32.totalorder %s1845_s24, %s2978_s6 }
  0x5f   : > { %p1848_p12 = pnand %p1846_p10, %p2343_p11 }
  0x61   : > { %p1849_p7 = pneg %p1848_p12 }
  0x63   : > { %p1854_p6 = pnand %p1852_p4, %p1849_p7 }
  0x65   : > { %1857 = shalt.err (!%p1854_p6)
}
  0x66   : > { %s1858_s18 = scalar_lea.vmem %s2333_s21, 128  ;;  %p1866_p2 = scmp.lt.s32.totalorder %s2333_s21, %s2333_s21 }
  0x67   : > { %p1859_p13 = scmp.ne.s32.totalorder %s2333_s21, %s1858_s18  ;;  %p1867_p3 = scmp.lt.s32.totalorder %s1858_s18, %s1858_s18 }
  0x69   : > { %p1861_p0 = pnand %p1859_p13, %p2343_p11  ;;  %p1868_p5 = por %p1867_p3, %p1866_p2 }
  0x6b   : > { %p1862_p1 = pneg %p1861_p0 }
  0x6d   : > { %p1869_p8 = pnand %p1868_p5, %p1862_p1 }
  0x6f   : > { %1872 = shalt.err (!%p1869_p8)
}
  0x70   : > { %1631 = dma.hbm_to_vmem [thread:$0]  (!%p2327_p9), %s2978_s6, 128, %s2333_s21, [#allocation14]  }
  0x71   : > { %s2188_s0 = smov [#allocation16]   ;;  %s2189_s25 = smov [#allocation12]  }
  0x72   : > { %s377_s23 = sshll.u32 %s2188_s0, 4  ;;  %s344_s24 = sshll.u32 %s2189_s25, 4  ;;  %s378_s23 = int_to_ptr.vmem [resolvable:$true] %s377_s23  ;;  %s345_s24 = int_to_ptr.vmem [resolvable:$true] %s344_s24 }
  0x73   : > { %s2979_s8 = sld [smem:[#allocation37_spill]] }
  0x79   : > { %s1873_s20 = scalar_lea.hbm %s2979_s8, 128 }
  0x7a   : > { %p1874_p10 = scmp.ne.s32.totalorder %s2979_s8, %s1873_s20  ;;  %p1880_p4 = scmp.lt.u32.totalorder %s1873_s20, %s2979_s8 }
  0x7c   : > { %p1876_p12 = pnand %p1874_p10, %p2343_p11 }
  0x7e   : > { %p1877_p7 = pneg %p1876_p12 }
  0x80   : > { %p1882_p6 = pnand %p1880_p4, %p1877_p7 }
  0x82   : > { %1885 = shalt.err (!%p1882_p6)
}
  0x83   : > { %s1886_s21 = scalar_lea.vmem %s378_s23, 128  ;;  %p1894_p2 = scmp.lt.s32.totalorder %s378_s23, %s378_s23 }
  0x84   : > { %p1887_p13 = scmp.ne.s32.totalorder %s378_s23, %s1886_s21  ;;  %p1895_p3 = scmp.lt.s32.totalorder %s1886_s21, %s1886_s21 }
  0x86   : > { %p1889_p0 = pnand %p1887_p13, %p2343_p11  ;;  %p1896_p5 = por %p1895_p3, %p1894_p2 }
  0x88   : > { %p1890_p1 = pneg %p1889_p0 }
  0x8a   : > { %p1897_p8 = pnand %p1896_p5, %p1890_p1 }
  0x8c   : > { %1900 = shalt.err (!%p1897_p8)
}
  0x8d   : > { %1637 = dma.hbm_to_vmem [thread:$0]  (!%p2327_p9), %s2979_s8, 128, %s378_s23, [#allocation17]  }
  0x8e   : > { %s2980_s5 = sld [smem:[#allocation34_spill]] }
  0x94   : > { %s1901_s26 = scalar_lea.hbm %s2980_s5, 128 }
  0x95   : > { %p1902_p10 = scmp.ne.s32.totalorder %s2980_s5, %s1901_s26  ;;  %p1908_p4 = scmp.lt.u32.totalorder %s1901_s26, %s2980_s5 }
  0x97   : > { %p1904_p12 = pnand %p1902_p10, %p2343_p11 }
  0x99   : > { %p1905_p7 = pneg %p1904_p12 }
  0x9b   : > { %p1910_p6 = pnand %p1908_p4, %p1905_p7 }
  0x9d   : > { %1913 = shalt.err (!%p1910_p6)
}
  0x9e   : > { %s1914_s16 = scalar_lea.vmem %s345_s24, 128  ;;  %p1922_p2 = scmp.lt.s32.totalorder %s345_s24, %s345_s24 }
  0x9f   : > { %p1915_p13 = scmp.ne.s32.totalorder %s345_s24, %s1914_s16  ;;  %p1923_p3 = scmp.lt.s32.totalorder %s1914_s16, %s1914_s16 }
  0xa1   : > { %p1917_p0 = pnand %p1915_p13, %p2343_p11  ;;  %p1924_p5 = por %p1923_p3, %p1922_p2 }
  0xa3   : > { %p1918_p1 = pneg %p1917_p0 }
  0xa5   : > { %p1925_p8 = pnand %p1924_p5, %p1918_p1 }
  0xa7   : > { %1928 = shalt.err (!%p1925_p8)
}
  0xa8   : > { %1628 = dma.hbm_to_vmem [thread:$0]  (!%p2327_p9), %s2980_s5, 128, %s345_s24, [#allocation11]  }
  0xa9   : > { %s2190_s11 = smov [#allocation15]   ;;  %s2191_s3 = smov [#allocation18]  }
  0xaa   : > { %s366_s0 = sshll.u32 %s2190_s11, 4  ;;  %s388_s25 = sshll.u32 %s2191_s3, 4  ;;  %s367_s0 = int_to_ptr.vmem [resolvable:$true] %s366_s0  ;;  %s389_s25 = int_to_ptr.vmem [resolvable:$true] %s388_s25 }
  0xab   : > { %s2981_s7 = sld [smem:[#allocation36_spill]] }
  0xb1   : > { %s1929_s20 = scalar_lea.hbm %s2981_s7, 128 }
  0xb2   : > { %p1930_p10 = scmp.ne.s32.totalorder %s2981_s7, %s1929_s20  ;;  %p1936_p4 = scmp.lt.u32.totalorder %s1929_s20, %s2981_s7 }
  0xb4   : > { %p1932_p12 = pnand %p1930_p10, %p2343_p11 }
  0xb6   : > { %p1933_p7 = pneg %p1932_p12 }
  0xb8   : > { %p1938_p6 = pnand %p1936_p4, %p1933_p7 }
  0xba   : > { %1941 = shalt.err (!%p1938_p6)
}
  0xbb   : > { %s1942_s24 = scalar_lea.vmem %s367_s0, 128  ;;  %p1950_p2 = scmp.lt.s32.totalorder %s367_s0, %s367_s0 }
  0xbc   : > { %p1943_p13 = scmp.ne.s32.totalorder %s367_s0, %s1942_s24  ;;  %p1951_p3 = scmp.lt.s32.totalorder %s1942_s24, %s1942_s24 }
  0xbe   : > { %p1945_p0 = pnand %p1943_p13, %p2343_p11  ;;  %p1952_p5 = por %p1951_p3, %p1950_p2 }
  0xc0   : > { %p1946_p1 = pneg %p1945_p0 }
  0xc2   : > { %p1953_p8 = pnand %p1952_p5, %p1946_p1 }
  0xc4   : > { %1956 = shalt.err (!%p1953_p8)
}
  0xc5   : > { %1634 = dma.hbm_to_vmem [thread:$0]  (!%p2327_p9), %s2981_s7, 128, %s367_s0, [#allocation14]  }
  0xc6   : > { %s2982_s9 = sld [smem:[#allocation38_spill]] }
  0xcc   : > { %s1957_s17 = scalar_lea.hbm %s2982_s9, 64 }
  0xcd   : > { %p1958_p10 = scmp.ne.s32.totalorder %s2982_s9, %s1957_s17  ;;  %p1964_p4 = scmp.lt.u32.totalorder %s1957_s17, %s2982_s9 }
  0xcf   : > { %p1960_p12 = pnand %p1958_p10, %p2343_p11 }
  0xd1   : > { %p1961_p7 = pneg %p1960_p12 }
  0xd3   : > { %p1966_p6 = pnand %p1964_p4, %p1961_p7 }
  0xd5   : > { %1969 = shalt.err (!%p1966_p6)
}
  0xd6   : > { %s1970_s23 = scalar_lea.vmem %s389_s25, 64  ;;  %p1978_p2 = scmp.lt.s32.totalorder %s389_s25, %s389_s25 }
  0xd7   : > { %p1971_p13 = scmp.ne.s32.totalorder %s389_s25, %s1970_s23  ;;  %p1979_p3 = scmp.lt.s32.totalorder %s1970_s23, %s1970_s23 }
  0xd9   : > { %p1973_p0 = pnand %p1971_p13, %p2343_p11  ;;  %p1980_p5 = por %p1979_p3, %p1978_p2 }
  0xdb   : > { %p1974_p1 = pneg %p1973_p0 }
  0xdd   : > { %p1981_p8 = pnand %p1980_p5, %p1974_p1 }
  0xdf   : > { %1984 = shalt.err (!%p1981_p8)
}
  0xe0   : > { %1640 = dma.hbm_to_vmem [thread:$0]  (!%p2327_p9), %s2982_s9, 64, %s389_s25, [#allocation17]  }
  0xe1   : > { %s2192_s21 = smov [#allocation19]   ;;  %s1985_s17 = scalar_lea.hbm %s2956_s10, 64 }
  0xe2   : > { %s399_s11 = sshll.u32 %s2192_s21, 4  ;;  %p1986_p10 = scmp.ne.s32.totalorder %s2956_s10, %s1985_s17  ;;  %s400_s11 = int_to_ptr.vmem [resolvable:$true] %s399_s11 }
  0xe3   : > { %p1992_p4 = scmp.lt.u32.totalorder %s1985_s17, %s2956_s10 }
  0xe4   : > { %p1988_p12 = pnand %p1986_p10, %p2343_p11 }
  0xe6   : > { %p1989_p7 = pneg %p1988_p12 }
  0xe8   : > { %p1994_p6 = pnand %p1992_p4, %p1989_p7 }
  0xea   : > { %1997 = shalt.err (!%p1994_p6)
}
  0xeb   : > { %s1998_s25 = scalar_lea.vmem %s400_s11, 64  ;;  %p2006_p2 = scmp.lt.s32.totalorder %s400_s11, %s400_s11 }
  0xec   : > { %p1999_p13 = scmp.ne.s32.totalorder %s400_s11, %s1998_s25  ;;  %p2007_p3 = scmp.lt.s32.totalorder %s1998_s25, %s1998_s25 }
  0xee   : > { %p2001_p0 = pnand %p1999_p13, %p2343_p11  ;;  %p2008_p5 = por %p2007_p3, %p2006_p2 }
  0xf0   : > { %p2002_p1 = pneg %p2001_p0 }
  0xf2   : > { %p2009_p8 = pnand %p2008_p5, %p2002_p1 }
  0xf4   : > { %2012 = shalt.err (!%p2009_p8)
}
  0xf5   : > { %1643 = dma.hbm_to_vmem [thread:$0]  (!%p2327_p9), %s2956_s10, 64, %s400_s11, [#allocation20]  }
  0xf6   : > { %s1488_s15 = sadd.s32 4294967294, %s2182_s12   ;;  %s50_s24 = sadd.s32 1, %s2178_s30 }
  0xf7   : > { %p52_p11 = scmp.ge.s32.totalorder %s50_s24, 2  ;;  %s59_s19 = sadd.s32 1, %s2170_s29 }
  0xf8   : > { %p66_p10 = scmp.ne.s32.totalorder %s2170_s29, %s2166_s28  ;;  %p67_p12 = scmp.eq.s32.totalorder %s2182_s12, 0 }
  0xf9   : > { %s3016_s24 = smov (%p52_p11, %s50_s24), 0  ;;  %p72_p4 = scmp.ne.s32.totalorder %s2166_s28, %s2162_s27 }
  0xfa   : > { %p2503_p7 = por %p67_p12, %p66_p10  ;;  %s54_s11 = ssub.s32 %s2178_s30, %s3016_s24 }
  0xfb   : > { %p296_p9 = scmp.eq.s32.totalorder %s2313_s13, 1  ;;  %p57_p6 = scmp.eq.s32.totalorder %s54_s11, 0 }
  0xfc   : > { %p2984_p13 = scmp.eq.s32.totalorder %s2313_s13, 0  ;;  %p302_p2 = scmp.eq.s32.totalorder %s1488_s15, 1 }
  0xfd   : > { %p2518_p1 = por %p296_p9, %p66_p10  ;;  %p1663_p5 = scmp.lt.s32.totalorder %s2182_s12, 2 }
  0xfe   : > { %p2514_p0 = por %p2984_p13, %p72_p4  ;;  %p2525_p3 = por %p302_p2, %p72_p4 }
  0xff   : > { %s2986_s26 = scalar_select %p2518_p1, 1, 0 }
 0x100   : > { %s2985_s3 = scalar_select %p2514_p0, 1, 0 }
 0x101   : > { %s2523_s17 = scalar_select %p57_p6, %s2170_s29, %s59_s19  }
 0x102   : > { %s2987_s20 = scalar_select %p2525_p3, 1, 0 }
 0x103   : > { %s410_s22 = sand.u32 1, %s2170_s29   ;;  %s1541_s18 = sshll.u32 %s2178_s30, 7 }
 0x104   : > { %s2532_s16 = sshll.u32 %s410_s22, 2  ;;  %s2537_s0 = scalar_lea.hbm %s2947_s1, %s1541_s18 }
 0x105   : > { %s414_s15 = scalar_lea.vmem [#allocation4], %s2532_s16  ;;  %p2542_p8 = pnand %p1663_p5, %p2503_p7 }
 0x106   : > { %s423_s19 = sshll.u32 %s414_s15, 4  ;;  %s2551_s23 = scalar_lea.hbm %s2948_s2, %s1541_s18  ;;  %s2546_s19 = int_to_ptr.vmem [resolvable:$true] %s423_s19 }
 0x107   : > { %s411_s5 = scalar_lea.sflag [#allocation5], %s410_s22  ;;  %s2013_s6 = scalar_lea.hbm %s2537_s0, 64 }
 0x108   : > { %p2014_p11 = scmp.ne.s32.totalorder %s2537_s0, %s2013_s6  ;;  %p2015_p10 = pneg %p2542_p8 }
 0x109   : > { %s2018_s7 = scalar_lea.hbm %s2947_s1, 256  ;;  %p2019_p4 = scmp.lt.u32.totalorder %s2537_s0, %s2947_s1 }
 0x10a   : > { %p2016_p12 = pnand %p2015_p10, %p2014_p11  ;;  %p2020_p9 = scmp.lt.u32.totalorder %s2018_s7, %s2013_s6 }
 0x10b   : > { %p2022_p13 = scmp.lt.u32.totalorder %s2013_s6, %s2537_s0 }
 0x10c   : > { %p2017_p7 = pneg %p2016_p12  ;;  %p2021_p6 = por %p2020_p9, %p2019_p4 }
 0x10e   : > { %p2023_p2 = por %p2022_p13, %p2021_p6 }
 0x110   : > { %p2024_p5 = pnand %p2023_p2, %p2017_p7 }
 0x112   : > { %2027 = shalt.err (!%p2024_p5)
}
 0x113   : > { %s2028_s4 = scalar_lea.vmem %s2546_s19, 64  ;;  %s2193_s22 = smov [#allocation4]  }
 0x114   : > { %p2029_p11 = scmp.ne.s32.totalorder %s2546_s19, %s2028_s4  ;;  %s2033_s18 = sshll.u32 %s2193_s22, 4  ;;  %s2034_s18 = int_to_ptr.vmem [resolvable:$false] %s2033_s18 }
 0x115   : > { %s2035_s8 = scalar_lea.vmem %s2034_s18, 128  ;;  %p2036_p1 = scmp.lt.s32.totalorder %s2546_s19, %s2034_s18 }
 0x116   : > { %p2031_p12 = pnand %p2029_p11, %p2015_p10  ;;  %p2037_p4 = scmp.lt.s32.totalorder %s2035_s8, %s2028_s4 }
 0x118   : > { %p2032_p3 = pneg %p2031_p12  ;;  %p2038_p9 = por %p2037_p4, %p2036_p1 }
 0x11a   : > { %p2039_p6 = pnand %p2038_p9, %p2032_p3 }
 0x11c   : > { %2042 = shalt.err (!%p2039_p6)
}
 0x11d   : > { %1647 = dma.hbm_to_vmem [thread:$0]  (!%p2542_p8), %s2537_s0, 64, %s2546_s19, %s411_s5  }
 0x11e   : > { %s430_s6 = sand.u32 1, %s2182_s12   ;;  %s2580_s7 = scalar_lea.hbm %s2551_s23, 64 }
 0x11f   : > { %s434_s9 = scalar_lea.vmem [#allocation7], %s2532_s16  ;;  %s431_s21 = scalar_lea.sflag [#allocation8], %s430_s6 }
 0x120   : > { %s444_s25 = sshll.u32 %s434_s9, 4  ;;  %s2073_s15 = scalar_lea.hbm %s2551_s23, 128  ;;  %s445_s25 = int_to_ptr.vmem [resolvable:$true] %s444_s25 }
 0x121   : > { %p2044_p1 = scmp.ne.s32.totalorder %s2580_s7, %s2073_s15  ;;  %s2048_s5 = scalar_lea.hbm %s2948_s2, 256 }
 0x122   : > { %p2049_p13 = scmp.lt.u32.totalorder %s2580_s7, %s2948_s2  ;;  %p2050_p2 = scmp.lt.u32.totalorder %s2048_s5, %s2073_s15 }
 0x123   : > { %p2046_p3 = pnand %p2044_p1, %p2015_p10  ;;  %p2052_p11 = scmp.lt.u32.totalorder %s2073_s15, %s2580_s7 }
 0x124   : > { %p2051_p5 = por %p2050_p2, %p2049_p13 }
 0x125   : > { %p2047_p7 = pneg %p2046_p3 }
 0x126   : > { %p2053_p12 = por %p2052_p11, %p2051_p5 }
 0x128   : > { %p2054_p4 = pnand %p2053_p12, %p2047_p7 }
 0x12a   : > { %2057 = shalt.err (!%p2054_p4)
}
 0x12b   : > { %s2058_s16 = scalar_lea.vmem %s445_s25, 64  ;;  %s2194_s23 = smov [#allocation7]  }
 0x12c   : > { %p2059_p9 = scmp.ne.s32.totalorder %s445_s25, %s2058_s16  ;;  %s2063_s18 = sshll.u32 %s2194_s23, 4  ;;  %s2064_s18 = int_to_ptr.vmem [resolvable:$false] %s2063_s18 }
 0x12d   : > { %s2065_s8 = scalar_lea.vmem %s2064_s18, 128  ;;  %p2066_p3 = scmp.lt.s32.totalorder %s445_s25, %s2064_s18 }
 0x12e   : > { %p2061_p6 = pnand %p2059_p9, %p2015_p10  ;;  %p2067_p0 = scmp.lt.s32.totalorder %s2065_s8, %s2058_s16 }
 0x130   : > { %p2062_p1 = pneg %p2061_p6  ;;  %p2068_p2 = por %p2067_p0, %p2066_p3 }
 0x132   : > { %p2069_p13 = pnand %p2068_p2, %p2062_p1 }
 0x134   : > { %2072 = shalt.err (!%p2069_p13)
}
 0x135   : > { %1650 = dma.hbm_to_vmem [thread:$0]  (!%p2542_p8), %s2580_s7, 64, %s445_s25, %s431_s21  }
 0x136   : > { %p2989_p7 = scmp.ne.s32.totalorder %s2973_s14, 0 }
 0x137   : > { %s2605_s6 = sand.u32 (!%p2989_p7), 1, %s2166_s28   ;;  %p2990_p0 = scmp.ne.s32.totalorder (!%p2989_p7), %s2985_s3, 0 }
 0x138   : > { %453 = sbr.rel (%p2989_p7) target bundleno = 1992 (0x7c8), region = 60  ;;  %s2608_s9 = sshll.u32 (!%p2989_p7), %s2605_s6, 2 }
 0x139   : > { %s456_s15 = scalar_lea.sflag (!%p2989_p7), [#allocation5], %s2605_s6  ;;  %s459_s4 = scalar_lea.vmem (!%p2989_p7), [#allocation4], %s2608_s9 }
 0x13f   : > { %2129 = dma.done.wait (%p2990_p0), %s456_s15, 64  }
 0x140   : > { %2131 = vsyncadd (%p2990_p0), %s456_s15, 4294967232  ;;  %s464_s14 = sand.u32 1, %s2313_s13   ;;  %s468_s7 = scalar_lea.vmem [#allocation7], %s2608_s9 }
 0x141   : > { %s465_s11 = scalar_lea.sflag [#allocation8], %s464_s14 }
 0x142   : > { %2133 = dma.done.wait (%p2990_p0), %s465_s11, 64  }
 0x143   : > { %2135 = vsyncadd (%p2990_p0), %s465_s11, 4294967232  ;;  %p2991_p8 = scmp.eq.s32.totalorder %s2313_s13, 0 }
 0x145   : > { %2137 = dma.done.wait (%p2991_p8), [#allocation8], 64   ;;  %p2992_p10 = pmov %p2991_p8 }
 0x146   : > { %p2993_p5 = pmov %p2991_p8 }
 0x147   : > { %2139 = vsyncadd (%p2992_p10), [#allocation8], 4294967232 }
 0x148   : > { %2141 = dma.done.wait (%p2993_p5), [#allocation11], 192   ;;  %p2994_p11 = pmov %p2993_p5 }
 0x149   : > { %p2995_p12 = pmov %p2993_p5 }
 0x14a   : > { %2143 = vsyncadd (%p2994_p11), [#allocation11], 4294967104 }
 0x14b   : > { %2145 = dma.done.wait (%p2995_p12), [#allocation14], 256   ;;  %p2996_p4 = pmov %p2993_p5 }
 0x14d   : > { %2147 = vsyncadd (%p2996_p4), [#allocation14], 4294967040  ;;  %p2997_p9 = pmov %p2996_p4 }
 0x14e   : > { %p2998_p6 = pmov %p2996_p4 }
 0x14f   : > { %2149 = dma.done.wait (%p2997_p9), [#allocation17], 192  }
 0x150   : > { %2151 = vsyncadd (%p2998_p6), [#allocation17], 4294967104  ;;  %p2999_p1 = pmov %p2996_p4 }
 0x152   : > { %2153 = dma.done.wait (%p2999_p1), [#allocation20], 64   ;;  %p3000_p3 = pmov %p2999_p1 }
 0x153   : > { %v2195_v0 = vmov 0   ;;  %v555_v1 = vld [vmem:[#allocation9] sm:$0xf]  ;;  %v554_v2 = vld [vmem:[#allocation10] sm:$0xf]  ;;  %v804_v3 = vld [vmem:[#allocation13] sm:$0xff] }
 0x154   : > { %2155 = vsyncadd (%p3000_p3), [#allocation20], 4294967232  ;;  %1744 = vset.pattern.permute.xlu0 %v2195_v0  ;;  %1755 = vset.pattern.permute.xlu1 %v2195_v0  ;;  %v898_v4 = vld [vmem:[#allocation16] sm:$0xff]  ;;  %v2644_v5 = vld [vmem:[%s459_s4] sm:$0xf]  ;;  %s2203_s13 = smov 127  }
 0x155   : > { %558 = vperm.xlu0 %1744, %v555_v1   ;;  %v2648_v6 = vld [vmem:[%s468_s7] sm:$0xf]  ;;  %v2196_v30 = vmov 683565275   ;;  %v2197_v34 = vmov 2475754826  }
 0x156   : > { %v2198_v36 = vmov 2131351028   ;;  %v2199_v38 = vmov 2102212464   ;;  %v2200_v40 = vmov 920167782  }
 0x157   : > { %v2201_v47 = vmov 1326507024   ;;  %s2204_s3 = smov 126   ;;  %s3001_s25 = sld [smem:[#allocation31_spill]] }
 0x158   : > { %s2208_s22 = smov 1   ;;  %s541_s0 = scalar_lea.vmem [#allocation21], %s2608_s9 }
 0x159   : > { %775 = vperm.xlu0 %1744, %v554_v2   ;;  %s1304_s19 = sshll.u32 %s541_s0, 4  ;;  %s3006_s18 = sld [smem:[#allocation39_spill]]  ;;  %s2898_s19 = int_to_ptr.vmem [resolvable:$true] %s1304_s19 }
 0x15a   : > { %s1290_s15 = scalar_lea.sflag [#allocation6], %s2605_s6  ;;  %p3007_p13 = scmp.ne.s32.totalorder %s2986_s26, 0 }
 0x15b   : > { %s2209_s9 = smov [#allocation21]  }
 0x15c   : > { %s2078_s14 = sshll.u32 %s2209_s9, 4  ;;  %s2079_s14 = int_to_ptr.vmem [resolvable:$false] %s2078_s14 }
 0x15d   : > { %807 = vperm.xlu0 %1744, %v804_v3   ;;  %s2744_s21 = sld [smem:[#allocation3 + %s3001_s25]]  ;;  %s1538_s5 = sshll.u32 %s3001_s25, 6 }
 0x15e   : > { %s2080_s11 = scalar_lea.vmem %s2079_s14, 128  ;;  %p2081_p8 = scmp.lt.s32.totalorder %s2898_s19, %s2079_s14 }
 0x15f   : > { %s2896_s8 = scalar_lea.hbm %s3006_s18, %s1538_s5 }
 0x161   : > { %1119 = vperm.xlu0 %1744, %v898_v4  }
 0x1d4   : > { %v559_v7 = vpop.permute.xlu0 %558 }
 0x1d5   : > { %v2651_v8 = vmul.f32 %v559_v7, %v2644_v5  ;;  %v2654_v9 = vmul.f32 %v559_v7, %v2648_v6 }
 0x1d7   : > { %v563_v10 = vand.u32 2147483647, %v2651_v8  ;;  %v566_v11 = vand.u32 2139095040, %v2651_v8  ;;  %v670_v12 = vand.u32 2139095040, %v2654_v9  ;;  %v667_v15 = vand.u32 2147483647, %v2654_v9 }
 0x1d8   : > { %vm565_vm14 = vcmp.lt.s32.totalorder %v2651_v8, 0 }
 0x1d9   : > { %v567_v13 = vshrl.u32 %v566_v11, 23  ;;  %v570_v14 = vand.u32 8388607, %v563_v10  ;;  %v671_v16 = vshrl.u32 %v670_v12, 23  ;;  %v2664_v21 = vand.u32 8388607, %v667_v15 }
 0x1da   : > { %vm564_vm15 = vcmp.le.f32.partialorder %v563_v10, 0.7853982 }
 0x1db   : > { %v1517_v17 = vadd.s32 4294967169, %v567_v13  ;;  %v1521_v18 = vadd.s32 4294967169, %v671_v16  ;;  %v571_v20 = vor.u32 8388608, %v570_v14  ;;  %v675_v28 = vor.u32 8388608, %v2664_v21 }
 0x1dd   : > { %v573_v19 = vadd.s32 1, %v1517_v17  ;;  %v677_v22 = vadd.s32 1, %v1521_v18  ;;  %v2666_v27 = vshll.u32 %v571_v20, 8 }
 0x1df   : > { %vm574_vm0 = vcmp.gt.s32.totalorder %v573_v19, 0  ;;  %vm678_vm1 = vcmp.gt.s32.totalorder %v677_v22, 0 }
 0x1e0   : > { %v575_v23 = vsel %vm574_vm0, %v573_v19, 0  ;;  %v679_v26 = vsel %vm678_vm1, %v677_v22, 0  ;;  %vm669_vm0 = vcmp.lt.s32.totalorder %v2654_v9, 0  ;;  %vm668_vm1 = vcmp.le.f32.partialorder %v667_v15, 0.7853982 }
 0x1e1   : > { %v576_v24 = vshrl.u32 %v575_v23, 5  ;;  %v577_v25 = vand.u32 31, %v575_v23  ;;  %v2670_v32 = vshrl.u32 %v679_v26, 5  ;;  %v681_v33 = vand.u32 31, %v679_v26 }
 0x1e3   : > { %v578_v29 = vsub.s32 32, %v577_v25  ;;  %v580_v31 = vshll.u32 %v2196_v30, %v577_v25  ;;  %v583_v35 = vshll.u32 %v2197_v34, %v577_v25  ;;  %v586_v37 = vshll.u32 %v2198_v36, %v577_v25 }
 0x1e4   : > { %v589_v39 = vshll.u32 %v2199_v38, %v577_v25  ;;  %v592_v41 = vshll.u32 %v2200_v40, %v577_v25  ;;  %vm595_vm2 = vcmp.lt.s32.totalorder %v576_v24, 1  ;;  %vm596_vm3 = vcmp.lt.s32.totalorder %v576_v24, 2 }
 0x1e5   : > { %v581_v42 = vshrl.u32 %v2197_v34, %v578_v29  ;;  %v584_v43 = vshrl.u32 %v2198_v36, %v578_v29  ;;  %v587_v44 = vshrl.u32 %v2199_v38, %v578_v29  ;;  %v579_v45 = vshrl.u32 %v2196_v30, %v578_v29 }
 0x1e6   : > { %v590_v46 = vshrl.u32 %v2200_v40, %v578_v29  ;;  %v593_v48 = vshrl.u32 %v2201_v47, %v578_v29  ;;  %v682_v52 = vsub.s32 32, %v681_v33  ;;  %vm597_vm4 = vcmp.lt.s32.totalorder %v576_v24, 3 }
 0x1e7   : > { %v582_v49 = vor.u32 %v581_v42, %v580_v31  ;;  %v585_v50 = vor.u32 %v584_v43, %v583_v35  ;;  %v588_v51 = vor.u32 %v587_v44, %v586_v37  ;;  %vm598_vm5 = vcmp.lt.s32.totalorder %v576_v24, 4 }
 0x1e8   : > { %v591_v53 = vor.u32 %v590_v46, %v589_v39  ;;  %v594_v54 = vor.u32 %v593_v48, %v592_v41  ;;  %v684_v62 = vshll.u32 %v2196_v30, %v681_v33  ;;  %v685_v1 = vshrl.u32 %v2197_v34, %v682_v52 }
 0x1e9   : > { %v599_v55 = vsel %vm595_vm2, %v579_v45, %v582_v49  ;;  %v600_v56 = vsel %vm598_vm5, %v588_v51, 2102212464  ;;  %v603_v57 = vsel %vm595_vm2, %v582_v49, %v585_v50  ;;  %v607_v58 = vsel %vm595_vm2, %v585_v50, %v588_v51 }
 0x1ea   : > { %v601_v59 = vsel %vm597_vm4, %v585_v50, %v600_v56  ;;  %v604_v60 = vsel %vm598_vm5, %v591_v53, 920167782  ;;  %v608_v61 = vsel %vm598_vm5, %v594_v54, 1326507024  ;;  %v687_v2 = vshll.u32 %v2197_v34, %v681_v33 }
 0x1eb   : > { %v605_v63 = vsel %vm597_vm4, %v588_v51, %v604_v60  ;;  %v609_v0 = vsel %vm597_vm4, %v591_v53, %v608_v61  ;;  %v602_v3 = vsel %vm596_vm3, %v599_v55, %v601_v59  ;;  %v688_v11 = vshrl.u32 %v2198_v36, %v682_v52 }
 0x1ec   : > { %v606_v4 = vsel %vm596_vm3, %v603_v57, %v605_v63  ;;  %v610_v7 = vsel %vm596_vm3, %v607_v58, %v609_v0  ;;  %v686_v17 = vor.u32 %v685_v1, %v684_v62  ;;  %v690_v19 = vshll.u32 %v2198_v36, %v681_v33 }
 0x1ed   : > { %v2693_v12 = vmul.u32.u64.low %v2666_v27, %v610_v7  ;;  %v2694_v13 = vmul.u32.u64.high %v2666_v27, %v610_v7, %v2693_v12  ;;  %v2697_v14 = vmul.u32.u64.low %v2666_v27, %v606_v4  ;;  %v2698_v16 = vmul.u32.u64.high %v2666_v27, %v606_v4, %v2697_v14 }
 0x1ee   : > { %v689_v18 = vor.u32 %v688_v11, %v687_v2  ;;  %v691_v20 = vshrl.u32 %v2199_v38, %v682_v52  ;;  %v693_v21 = vshll.u32 %v2199_v38, %v681_v33  ;;  %v694_v22 = vshrl.u32 %v2200_v40, %v682_v52 }
 0x1ef   : > { %v697_v23 = vshrl.u32 %v2201_v47, %v682_v52  ;;  %v715_v24 = vshll.u32 %v675_v28, 8  ;;  %v618_v25 = vmul.u32 %v2666_v27, %v602_v3  ;;  %v683_v26 = vshrl.u32 %v2196_v30, %v682_v52 }
 0x1f0   : > { %v692_v29 = vor.u32 %v691_v20, %v690_v19  ;;  %v696_v31 = vshll.u32 %v2200_v40, %v681_v33  ;;  %vm620_vm6 = vc.u32 %v2694_v13, %v2697_v14  ;;  %v621_v35 = vadd.s32 1, %v2698_v16 }
 0x1f1   : > { %v695_v37 = vor.u32 %v694_v22, %v693_v21  ;;  %vm699_vm7 = vcmp.lt.s32.totalorder %v2670_v32, 1  ;;  %vm701_vm8 = vcmp.lt.s32.totalorder %v2670_v32, 3  ;;  %vm702_vm9 = vcmp.lt.s32.totalorder %v2670_v32, 4 }
 0x1f2   : > { %v698_v39 = vor.u32 %v697_v23, %v696_v31  ;;  %v707_v28 = vsel %vm699_vm7, %v686_v17, %v689_v18  ;;  %v622_v27 = vsel %vm620_vm6, %v621_v35, %v2698_v16  ;;  %v704_v41 = vsel %vm702_vm9, %v692_v29, 2102212464 }
 0x1f3   : > { %v708_v42 = vsel %vm702_vm9, %v695_v37, 920167782  ;;  %v711_v43 = vsel %vm699_vm7, %v689_v18, %v692_v29  ;;  %v623_v44 = vadd.s32 %v622_v27, %v618_v25  ;;  %vm700_vm10 = vcmp.lt.s32.totalorder %v2670_v32, 2 }
 0x1f4   : > { %v709_v33 = vsel %vm701_vm8, %v692_v29, %v708_v42  ;;  %v712_v45 = vsel %vm702_vm9, %v698_v39, 1326507024  ;;  %v703_v46 = vsel %vm699_vm7, %v683_v26, %v686_v17  ;;  %v705_v48 = vsel %vm701_vm8, %v689_v18, %v704_v41 }
 0x1f5   : > { %v710_v49 = vsel %vm700_vm10, %v707_v28, %v709_v33  ;;  %v713_v50 = vsel %vm701_vm8, %v695_v37, %v712_v45  ;;  %v624_v51 = vadd.s32 536870912, %v623_v44  ;;  %v706_v58 = vsel %vm700_vm10, %v703_v46, %v705_v48 }
 0x1f6   : > { %v714_v52 = vsel %vm700_vm10, %v711_v43, %v713_v50  ;;  %v2715_v53 = vmul.u32.u64.low %v715_v24, %v710_v49  ;;  %v2716_v54 = vmul.u32.u64.high %v715_v24, %v710_v49, %v2715_v53  ;;  %v722_v32 = vmul.u32 %v715_v24, %v706_v58 }
 0x1f7   : > { %v2718_v55 = vmul.u32.u64.low %v715_v24, %v714_v52  ;;  %v2719_v56 = vmul.u32.u64.high %v715_v24, %v714_v52, %v2718_v55  ;;  %v625_v57 = vshrl.u32 %v624_v51, 30  ;;  %v619_v18 = vadd.s32 %v2697_v14, %v2694_v13 }
 0x1f8   : > { %v725_v60 = vadd.s32 1, %v2716_v54  ;;  %vm655_vm5 = vweird.f32 %v2651_v8  ;;  %vm759_vm9 = vweird.f32 %v2654_v9  ;;  %vm790_vm10 = vcmask 1039360  }
 0x1f9   : > { %v626_v59 = vshll.u32 %v625_v57, 30  ;;  %vm724_vm11 = vc.u32 %v2719_v56, %v2715_v53  ;;  %v723_v27 = vadd.s32 %v2715_v53, %v2719_v56  ;;  %v649_v14 = vsub.s32 4, %v625_v57 }
 0x1fa   : > { %v726_v62 = vsel %vm724_vm11, %v725_v60, %v2716_v54  ;;  %vm800_vm11 = vcmask 1043456  }
 0x1fb   : > { %v627_v61 = vsub.s32 %v623_v44, %v626_v59  ;;  %v727_v63 = vadd.s32 %v726_v62, %v722_v32  ;;  %v650_v50 = vsel %vm565_vm14, %v649_v14, %v625_v57 }
 0x1fc   : > { %v652_v55 = vsel %vm564_vm15, 0, %v650_v50  ;;  %v803_v50 = vld [vmem:[#allocation12] sm:$0xff] }
 0x1fd   : > { %v629_v0 = vsub.s32 0, %v627_v61  ;;  %v728_v1 = vadd.s32 536870912, %v727_v63  ;;  %v656_v59 = vadd.s32 3, %v652_v55 }
 0x1ff   : > { %v1518_v2 = vmin.u32 %v629_v0, %v627_v61  ;;  %v729_v3 = vshrl.u32 %v728_v1, 30  ;;  %v657_v57 = vand.u32 3, %v656_v59 }
 0x201   : > { %v631_v4 = vclz %v1518_v2  ;;  %v730_v7 = vshll.u32 %v729_v3, 30  ;;  %v753_v58 = vsub.s32 4, %v729_v3  ;;  %vm662_vm2 = vcmp.eq.s32.totalorder %v657_v57, 2 }
 0x202   : > { %vm659_vm3 = vcmp.eq.s32.totalorder %v657_v57, 0  ;;  %vm658_vm4 = vcmp.lt.s32.totalorder %v657_v57, 2 }
 0x203   : > { %v1519_v11 = vadd.s32 4294967294, %v631_v4  ;;  %v731_v12 = vsub.s32 %v727_v63, %v730_v7  ;;  %v754_v10 = vsel %vm669_vm0, %v753_v58, %v729_v3 }
 0x204   : > { %v756_v63 = vsel %vm668_vm1, 0, %v754_v10 }
 0x205   : > { %vm1520_vm12 = vcmp.lt.s32.totalorder %v1519_v11, 0  ;;  %v733_v17 = vsub.s32 0, %v731_v12  ;;  %v760_v7 = vadd.s32 3, %v756_v63 }
 0x206   : > { %v634_v16 = vsel %vm1520_vm12, 0, %v1519_v11  ;;  %vm798_vm12 = vcmask 1031168  }
 0x207   : > { %v635_v19 = vsub.s32 32, %v634_v16  ;;  %v639_v20 = vsub.s32 4294967266, %v634_v16  ;;  %v1522_v21 = vmin.u32 %v733_v17, %v731_v12  ;;  %v636_v22 = vshll.u32 %v627_v61, %v634_v16 }
 0x209   : > { %v637_v23 = vshrl.u32 %v619_v18, %v635_v19  ;;  %v640_v24 = vadd.s32 127, %v639_v20  ;;  %v735_v25 = vclz %v1522_v21  ;;  %v776_v20 = vpop.permute.xlu0 %775 }
 0x20b   : > { %v638_v26 = vor.u32 %v637_v23, %v636_v22  ;;  %v641_v29 = vshll.u32 %v640_v24, 23  ;;  %v1523_v31 = vadd.s32 4294967294, %v735_v25 }
 0x20d   : > { %v642_v35 = vor.u32 4788187, %v641_v29  ;;  %vm1524_vm13 = vcmp.lt.s32.totalorder %v1523_v31, 0  ;;  %v645_v39 = vcvt.s32.f32 %v638_v26  ;;  %v2752_v55 = vpop.permute.xlu0 %807 }
 0x20e   : > { %v738_v28 = vsel %vm1524_vm13, 0, %v1523_v31  ;;  %vm2205_vm13 = vmmov 1  }
 0x20f   : > { %v643_v37 = vand.u32 2147483647, %v642_v35  ;;  %v739_v41 = vsub.s32 32, %v738_v28  ;;  %v743_v42 = vsub.s32 4294967266, %v738_v28  ;;  %v740_v43 = vshll.u32 %v731_v12, %v738_v28 }
 0x210   : > { %v761_v12 = vand.u32 3, %v760_v7  ;;  %v2202_v28 = vmov 0.0  }
 0x211   : > { %v646_v13 = vmul.f32 %v645_v39, %v643_v37  ;;  %v741_v44 = vshrl.u32 %v723_v27, %v739_v41  ;;  %v744_v33 = vadd.s32 127, %v743_v42  ;;  %882 = vmatprep.mubr.f32.mxu0 %v2202_v28 }
 0x212   : > { %vm766_vm6 = vcmp.eq.s32.totalorder %v761_v12, 2  ;;  %vm763_vm7 = vcmp.eq.s32.totalorder %v761_v12, 0  ;;  %vm762_vm8 = vcmp.lt.s32.totalorder %v761_v12, 2 }
 0x213   : > { %v647_v45 = vxor.u32 2147483648, %v646_v13  ;;  %v742_v46 = vor.u32 %v741_v44, %v740_v43  ;;  %v745_v48 = vshll.u32 %v744_v33, 23 }
 0x215   : > { %v648_v49 = vsel %vm565_vm14, %v647_v45, %v646_v13  ;;  %v746_v51 = vor.u32 4788187, %v745_v48  ;;  %v749_v54 = vcvt.s32.f32 %v742_v46  ;;  %vm1557_vm14 = vmpackc.low %vm800_vm11, %vm2205_vm13 }
 0x216   : > { %v651_v52 = vsel %vm564_vm15, %v2651_v8, %v648_v49  ;;  %vm810_vm15 = vcmask 97280  }
 0x217   : > { %1761 = vcosq.f32 %v651_v52  ;;  %v747_v53 = vand.u32 2147483647, %v746_v51  ;;  %v546_v51 = vlaneseq }
 0x218   : > { %1763 = vsinq.f32 %v651_v52 }
 0x219   : > { %v750_v56 = vmul.f32 %v749_v54, %v747_v53  ;;  %v2746_v52 = vand.u32 127, %v546_v51  ;;  %v889_v54 = vstv %s2744_s21 }
 0x21b   : > { %v751_v60 = vxor.u32 2147483648, %v750_v56  ;;  %v2749_v53 = vadd.s32 4294967295, %v2746_v52 }
 0x21d   : > { %v752_v32 = vsel %vm669_vm0, %v751_v60, %v750_v56  ;;  %vm2757_vm0 = vcmp.lt.s32.totalorder %v2749_v53, %v889_v54 }
 0x21e   : > { %v755_v61 = vsel %vm668_vm1, %v2654_v9, %v752_v32  ;;  %v899_v9 = vld [vmem:[#allocation15] sm:$0xff] }
 0x21f   : > { %1765 = vcosq.f32 %v755_v61 }
 0x220   : > { %1767 = vsinq.f32 %v755_v61 }
 0x221   : > { %v1762_v62 = vpop.eup %1761 }
 0x222   : > { %v1764_v0 = vpop.eup %1763  ;;  %v663_v1 = vxor.u32 2147483648, %v1762_v62 }
 0x223   : > { %v660_v2 = vxor.u32 2147483648, %v1764_v0 }
 0x224   : > { %v664_v4 = vsel %vm662_vm2, %v663_v1, %v1764_v0 }
 0x225   : > { %v661_v11 = vsel %vm659_vm3, %v1762_v62, %v660_v2 }
 0x226   : > { %v665_v15 = vsel %vm658_vm4, %v661_v11, %v664_v4 }
 0x227   : > { %v666_v3 = vsel %vm655_vm5, nan, %v665_v15 }
 0x228   : > { %v771_v16 = vmul.f32 %v666_v3, %v666_v3 }
 0x229   : > { %v1766_v17 = vpop.eup %1765 }
 0x22a   : > { %v1768_v18 = vpop.eup %1767  ;;  %v767_v19 = vxor.u32 2147483648, %v1766_v17  ;;  %v778_v23 = vmul.f32 %v776_v20, %v771_v16 }
 0x22b   : > { %v764_v21 = vxor.u32 2147483648, %v1768_v18 }
 0x22c   : > { %v768_v22 = vsel %vm766_vm6, %v767_v19, %v1768_v18  ;;  %v780_v29 = vadd.f32 %v778_v23, %v2644_v5 }
 0x22d   : > { %v765_v24 = vsel %vm763_vm7, %v1766_v17, %v764_v21 }
 0x22e   : > { %v769_v25 = vsel %vm762_vm8, %v765_v24, %v768_v22  ;;  %v784_v37 = vrot.slane %v780_v29, 4 }
 0x22f   : > { %v770_v26 = vsel %vm759_vm9, nan, %v769_v25 }
 0x230   : > { %v772_v8 = vmul.f32 %v770_v26, %v770_v26 }
 0x232   : > { %v779_v31 = vmul.f32 %v776_v20, %v772_v8 }
 0x234   : > { %v781_v35 = vadd.f32 %v779_v31, %v2648_v6 }
 0x236   : > { %v785_v39 = vrot.slane %v781_v35, 4  ;;  %v1750_v41 = vpack.i.bf16 %v781_v35, %v780_v29 }
 0x238   : > { %v1745_v27 = vpack.i.bf16 %v785_v39, %v784_v37 }
 0x23a   : > { %1746 = vrot.lane.b32.xlu1 %v1745_v27, %s2203_s13 }
 0x23e   : > { %1751 = vrot.lane.b32.xlu1 %v1750_v41, %s2204_s3 }
 0x242   : > { %902 = vperm.xlu1 %1755, %v899_v9  }
 0x2ac   : > { %v1747_v42 = vpop.permute.xlu1 %1746 }
 0x2ad   : > { %v1749_v5 = vunpack.i.h.bf16 %v1747_v42  ;;  %v1748_v13 = vunpack.i.l.bf16 %v1747_v42 }
 0x2af   : > { %v791_v6 = vsel %vm790_vm10, %v1748_v13, %v1749_v5  ;;  %v802_v33 = vsel %vm800_vm11, %v781_v35, %v1749_v5 }
 0x2b0   : > { %v1752_v14 = vpop.permute.xlu1 %1751  ;;  %v801_v48 = vsel %vm800_vm11, %v780_v29, %v791_v6 }
 0x2b1   : > { %v1754_v43 = vunpack.i.h.bf16 %v1752_v14  ;;  %v1753_v44 = vunpack.i.l.bf16 %v1752_v14 }
 0x2b3   : > { %v1556_v45 = vpack.c.bf16 %v1754_v43, %v802_v33  ;;  %v799_v46 = vsel %vm798_vm12, %v1753_v44, %v1754_v43 }
 0x2b4   : > { %v1559_v49 = vpack.c.bf16 %v799_v46, %v801_v48 }
 0x2b5   : > { %1558 = vmatprep.subr.msk.bf16.mxu0 %vm1557_vm14, %v1556_v45 }
 0x2b6   : > { %1561 = vmatpush1.bf16.msk.msra.mxu0 %vm1557_vm14, %v1559_v49 }
 0x2b9   : > { %1527 = vmatmul.mubr.msk.f32.vlgmr.msra.gmra.mrb[0].mxu0 %vm810_vm15, %v803_v50 }
 0x2c1   : > { %v2764_v32 = vpop.permute.xlu1 %902 }
 0x38c   : > { %v884_v56 = vpop.f32.mrb[0].mxu0 }
 0x38d   : > { %v885_v59 = vadd.f32 %v884_v56, %v2752_v55  ;;  %v2762_v60 = vpop.f32.mrb[1].mxu0 }
 0x38f   : > { %v2768_v10 = vsel %vm2757_vm0, %v885_v59, 0.0 }
 0x390   : > { %v2772_v57 = vmul.f32 %v2764_v32, %v2768_v10 }
 0x392   : > { %v910_v61 = vand.u32 2139095040, %v2772_v57  ;;  %v907_v1 = vand.u32 2147483647, %v2772_v57  ;;  %vm909_vm8 = vcmp.lt.s32.totalorder %v2772_v57, 0  ;;  %vm999_vm15 = vweird.f32 %v2772_v57 }
 0x394   : > { %v911_v62 = vshrl.u32 %v910_v61, 23  ;;  %v914_v7 = vand.u32 8388607, %v907_v1  ;;  %vm908_vm9 = vcmp.le.f32.partialorder %v907_v1, 0.7853982 }
 0x396   : > { %v1528_v63 = vadd.s32 4294967169, %v911_v62  ;;  %v915_v24 = vor.u32 8388608, %v914_v7 }
 0x398   : > { %v917_v0 = vadd.s32 1, %v1528_v63  ;;  %v955_v13 = vshll.u32 %v915_v24, 8 }
 0x39a   : > { %vm918_vm1 = vcmp.gt.s32.totalorder %v917_v0, 0 }
 0x39b   : > { %v919_v2 = vsel %vm918_vm1, %v917_v0, 0  ;;  %vm1126_vm1 = vcmp.eq.s32.totalorder %v2749_v53, 1 }
 0x39c   : > { %v921_v4 = vand.u32 31, %v919_v2  ;;  %v920_v15 = vshrl.u32 %v919_v2, 5 }
 0x39e   : > { %v922_v11 = vsub.s32 32, %v921_v4  ;;  %v924_v3 = vshll.u32 %v2196_v30, %v921_v4  ;;  %v927_v12 = vshll.u32 %v2197_v34, %v921_v4  ;;  %v930_v18 = vshll.u32 %v2198_v36, %v921_v4 }
 0x39f   : > { %v933_v20 = vshll.u32 %v2199_v38, %v921_v4  ;;  %v936_v22 = vshll.u32 %v2200_v40, %v921_v4  ;;  %vm939_vm2 = vcmp.lt.s32.totalorder %v920_v15, 1  ;;  %vm942_vm3 = vcmp.lt.s32.totalorder %v920_v15, 4 }
 0x3a0   : > { %v925_v16 = vshrl.u32 %v2197_v34, %v922_v11  ;;  %v928_v17 = vshrl.u32 %v2198_v36, %v922_v11  ;;  %v931_v19 = vshrl.u32 %v2199_v38, %v922_v11  ;;  %v934_v21 = vshrl.u32 %v2200_v40, %v922_v11 }
 0x3a1   : > { %v937_v23 = vshrl.u32 %v2201_v47, %v922_v11  ;;  %v923_v27 = vshrl.u32 %v2196_v30, %v922_v11  ;;  %vm941_vm4 = vcmp.lt.s32.totalorder %v920_v15, 3  ;;  %vm940_vm5 = vcmp.lt.s32.totalorder %v920_v15, 2 }
 0x3a2   : > { %v926_v25 = vor.u32 %v925_v16, %v924_v3  ;;  %v929_v26 = vor.u32 %v928_v17, %v927_v12  ;;  %v932_v8 = vor.u32 %v931_v19, %v930_v18  ;;  %v935_v29 = vor.u32 %v934_v21, %v933_v20 }
 0x3a3   : > { %v938_v31 = vor.u32 %v937_v23, %v936_v22 }
 0x3a4   : > { %v944_v35 = vsel %vm942_vm3, %v932_v8, 2102212464  ;;  %v947_v37 = vsel %vm939_vm2, %v926_v25, %v929_v26  ;;  %v951_v39 = vsel %vm939_vm2, %v929_v26, %v932_v8  ;;  %v948_v41 = vsel %vm942_vm3, %v935_v29, 920167782 }
 0x3a5   : > { %v952_v9 = vsel %vm942_vm3, %v938_v31, 1326507024  ;;  %v949_v42 = vsel %vm941_vm4, %v932_v8, %v948_v41  ;;  %v943_v6 = vsel %vm939_vm2, %v923_v27, %v926_v25  ;;  %v945_v14 = vsel %vm941_vm4, %v929_v26, %v944_v35 }
 0x3a6   : > { %v953_v5 = vsel %vm941_vm4, %v935_v29, %v952_v9  ;;  %v950_v43 = vsel %vm940_vm5, %v947_v37, %v949_v42  ;;  %v946_v49 = vsel %vm940_vm5, %v943_v6, %v945_v14  ;;  %vm1139_vm4 = vcmp.eq.s32.totalorder %v2749_v53, 4294967295 }
 0x3a7   : > { %v954_v44 = vsel %vm940_vm5, %v951_v39, %v953_v5  ;;  %v2792_v46 = vmul.u32.u64.low %v955_v13, %v950_v43  ;;  %v2793_v48 = vmul.u32.u64.high %v955_v13, %v950_v43, %v2792_v46  ;;  %v962_v51 = vmul.u32 %v955_v13, %v946_v49 }
 0x3a8   : > { %v2789_v33 = vmul.u32.u64.low %v955_v13, %v954_v44  ;;  %v2790_v45 = vmul.u32.u64.high %v955_v13, %v954_v44, %v2789_v33  ;;  %v2804_v44 = vpop.permute.xlu0 %1119  ;;  %vm1147_vm5 = vcmp.eq.s32.totalorder %v2749_v53, 14 }
 0x3a9   : > { %v965_v50 = vadd.s32 1, %v2793_v48 }
 0x3aa   : > { %vm964_vm6 = vc.u32 %v2790_v45, %v2792_v46  ;;  %v963_v3 = vadd.s32 %v2792_v46, %v2790_v45 }
 0x3ab   : > { %v966_v56 = vsel %vm964_vm6, %v965_v50, %v2793_v48  ;;  %v548_v48 = vadd.s32 128, %v2746_v52  ;;  %v887_v50 = vadd.f32 %v2762_v60, %v2752_v55 }
 0x3ac   : > { %v967_v59 = vadd.s32 %v966_v56, %v962_v51 }
 0x3ad   : > { %v553_v49 = vadd.s32 4294967295, %v548_v48 }
 0x3ae   : > { %v968_v61 = vadd.s32 536870912, %v967_v59 }
 0x3af   : > { %vm2814_vm2 = vcmp.lt.s32.totalorder %v553_v49, %v889_v54 }
 0x3b0   : > { %v969_v62 = vshrl.u32 %v968_v61, 30  ;;  %v2820_v51 = vsel %vm2814_vm2, %v887_v50, 0.0 }
 0x3b2   : > { %v970_v63 = vshll.u32 %v969_v62, 30  ;;  %v993_v26 = vsub.s32 4, %v969_v62 }
 0x3b4   : > { %v971_v0 = vsub.s32 %v967_v59, %v970_v63  ;;  %v994_v31 = vsel %vm909_vm8, %v993_v26, %v969_v62 }
 0x3b5   : > { %v996_v37 = vsel %vm908_vm9, 0, %v994_v31 }
 0x3b6   : > { %v973_v2 = vsub.s32 0, %v971_v0  ;;  %v1000_v39 = vadd.s32 3, %v996_v37 }
 0x3b8   : > { %v1529_v4 = vmin.u32 %v973_v2, %v971_v0  ;;  %v1001_v27 = vand.u32 3, %v1000_v39 }
 0x3ba   : > { %v975_v7 = vclz %v1529_v4  ;;  %vm1006_vm11 = vcmp.eq.s32.totalorder %v1001_v27, 2  ;;  %vm1003_vm13 = vcmp.eq.s32.totalorder %v1001_v27, 0  ;;  %vm1002_vm14 = vcmp.lt.s32.totalorder %v1001_v27, 2 }
 0x3bc   : > { %v1530_v11 = vadd.s32 4294967294, %v975_v7 }
 0x3be   : > { %vm1531_vm7 = vcmp.lt.s32.totalorder %v1530_v11, 0 }
 0x3bf   : > { %v978_v15 = vsel %vm1531_vm7, 0, %v1530_v11 }
 0x3c0   : > { %v979_v12 = vsub.s32 32, %v978_v15  ;;  %v983_v16 = vsub.s32 4294967266, %v978_v15  ;;  %v980_v17 = vshll.u32 %v971_v0, %v978_v15 }
 0x3c2   : > { %v981_v18 = vshrl.u32 %v963_v3, %v979_v12  ;;  %v984_v19 = vadd.s32 127, %v983_v16 }
 0x3c4   : > { %v982_v20 = vor.u32 %v981_v18, %v980_v17  ;;  %v985_v21 = vshll.u32 %v984_v19, 23 }
 0x3c6   : > { %v986_v22 = vor.u32 4788187, %v985_v21  ;;  %v989_v24 = vcvt.s32.f32 %v982_v20 }
 0x3c8   : > { %v987_v23 = vand.u32 2147483647, %v986_v22 }
 0x3ca   : > { %v990_v25 = vmul.f32 %v989_v24, %v987_v23 }
 0x3cc   : > { %v991_v8 = vxor.u32 2147483648, %v990_v25 }
 0x3ce   : > { %v992_v29 = vsel %vm909_vm8, %v991_v8, %v990_v25 }
 0x3cf   : > { %v995_v35 = vsel %vm908_vm9, %v2772_v57, %v992_v29 }
 0x3d0   : > { %1769 = vcosq.f32 %v995_v35 }
 0x3d1   : > { %1771 = vsinq.f32 %v995_v35 }
 0x3da   : > { %v1770_v41 = vpop.eup %1769 }
 0x3db   : > { %v1772_v9 = vpop.eup %1771  ;;  %v1007_v42 = vxor.u32 2147483648, %v1770_v41 }
 0x3dc   : > { %v1004_v5 = vxor.u32 2147483648, %v1772_v9 }
 0x3dd   : > { %v1008_v13 = vsel %vm1006_vm11, %v1007_v42, %v1772_v9 }
 0x3de   : > { %v1005_v6 = vsel %vm1003_vm13, %v1770_v41, %v1004_v5 }
 0x3df   : > { %v1009_v1 = vsel %vm1002_vm14, %v1005_v6, %v1008_v13 }
 0x3e0   : > { %v1010_v14 = vsel %vm999_vm15, nan, %v1009_v1 }
 0x3e1   : > { %v1115_v43 = vmul.f32 %v1010_v14, %v1010_v14 }
 0x3e3   : > { %v1122_v33 = vmul.f32 %v2804_v44, %v1115_v43 }
 0x3e5   : > { %v1124_v45 = vadd.f32 %v1122_v33, %v2768_v10  ;;  %v2824_v10 = vmul.f32 %v2764_v32, %v2820_v51 }
 0x3e7   : > { %v1132_v46 = vsel %vm1126_vm1, %v1124_v45, 0.0  ;;  %v1014_v56 = vand.u32 2139095040, %v2824_v10  ;;  %v1011_v4 = vand.u32 2147483647, %v2824_v10  ;;  %vm1013_vm14 = vcmp.lt.s32.totalorder %v2824_v10, 0 }
 0x3e8   : > { %1137 = vadd.xlane.f32.xlu1 %v1132_v46 }
 0x3e9   : > { %v1015_v52 = vshrl.u32 %v1014_v56, 23  ;;  %v1018_v21 = vand.u32 8388607, %v1011_v4  ;;  %vm1012_vm15 = vcmp.le.f32.partialorder %v1011_v4, 0.7853982 }
 0x3eb   : > { %v1532_v59 = vadd.s32 4294967169, %v1015_v52 }
 0x3ed   : > { %v1021_v61 = vadd.s32 1, %v1532_v59 }
 0x3ef   : > { %vm1022_vm3 = vcmp.gt.s32.totalorder %v1021_v61, 0 }
 0x3f0   : > { %v1023_v55 = vsel %vm1022_vm3, %v1021_v61, 0 }
 0x3f1   : > { %v1025_v60 = vand.u32 31, %v1023_v55  ;;  %v1024_v7 = vshrl.u32 %v1023_v55, 5 }
 0x3f3   : > { %v1026_v54 = vsub.s32 32, %v1025_v60  ;;  %v1037_v11 = vshll.u32 %v2199_v38, %v1025_v60  ;;  %v1040_v16 = vshll.u32 %v2200_v40, %v1025_v60  ;;  %v1028_v18 = vshll.u32 %v2196_v30, %v1025_v60 }
 0x3f4   : > { %v1034_v19 = vshll.u32 %v2198_v36, %v1025_v60  ;;  %vm1046_vm6 = vcmp.lt.s32.totalorder %v1024_v7, 4  ;;  %vm1043_vm7 = vcmp.lt.s32.totalorder %v1024_v7, 1  ;;  %vm1045_vm8 = vcmp.lt.s32.totalorder %v1024_v7, 3 }
 0x3f5   : > { %v1038_v63 = vshrl.u32 %v2200_v40, %v1026_v54  ;;  %v1041_v32 = vshrl.u32 %v2201_v47, %v1026_v54  ;;  %v1029_v15 = vshrl.u32 %v2197_v34, %v1026_v54  ;;  %v1032_v3 = vshrl.u32 %v2198_v36, %v1026_v54 }
 0x3f6   : > { %v1035_v12 = vshrl.u32 %v2199_v38, %v1026_v54  ;;  %v1031_v47 = vshll.u32 %v2197_v34, %v1025_v60  ;;  %v1019_v40 = vor.u32 8388608, %v1018_v21  ;;  %vm1044_vm9 = vcmp.lt.s32.totalorder %v1024_v7, 2 }
 0x3f7   : > { %v1039_v17 = vor.u32 %v1038_v63, %v1037_v11  ;;  %v1042_v20 = vor.u32 %v1041_v32, %v1040_v16  ;;  %v1030_v22 = vor.u32 %v1029_v15, %v1028_v18  ;;  %v1027_v42 = vshrl.u32 %v2196_v30, %v1026_v54 }
 0x3f8   : > { %v1033_v23 = vor.u32 %v1032_v3, %v1031_v47  ;;  %v1036_v24 = vor.u32 %v1035_v12, %v1034_v19  ;;  %v1059_v35 = vshll.u32 %v1019_v40, 8 }
 0x3f9   : > { %v1052_v25 = vsel %vm1046_vm6, %v1039_v17, 920167782  ;;  %v1056_v38 = vsel %vm1046_vm6, %v1042_v20, 1326507024  ;;  %v1047_v5 = vsel %vm1043_vm7, %v1027_v42, %v1030_v22 }
 0x3fa   : > { %v1051_v26 = vsel %vm1043_vm7, %v1030_v22, %v1033_v23  ;;  %v1053_v34 = vsel %vm1045_vm8, %v1036_v24, %v1052_v25  ;;  %v1055_v36 = vsel %vm1043_vm7, %v1033_v23, %v1036_v24  ;;  %v1057_v8 = vsel %vm1045_vm8, %v1039_v17, %v1056_v38 }
 0x3fb   : > { %v1054_v29 = vsel %vm1044_vm9, %v1051_v26, %v1053_v34  ;;  %v1058_v31 = vsel %vm1044_vm9, %v1055_v36, %v1057_v8  ;;  %v1048_v9 = vsel %vm1046_vm6, %v1036_v24, 2102212464  ;;  %v2206_v36 = vmov 0.0|0.0  }
 0x3fc   : > { %v2851_v37 = vmul.u32.u64.low %v1059_v35, %v1054_v29  ;;  %v2852_v39 = vmul.u32.u64.high %v1059_v35, %v1054_v29, %v2851_v37  ;;  %v2854_v27 = vmul.u32.u64.low %v1059_v35, %v1058_v31  ;;  %v2855_v41 = vmul.u32.u64.high %v1059_v35, %v1058_v31, %v2854_v27  ;;  %1562 = vmatprep.subr.bf16.mxu1 %v2206_v36 }
 0x3fd   : > { %v1049_v13 = vsel %vm1045_vm8, %v1033_v23, %v1048_v9  ;;  %vm1159_vm6 = vcmp.eq.s32.totalorder %v2749_v53, 16  ;;  %vm2207_vm7 = vmmov 0   ;;  %v1181_v9 = vld [vmem:[#allocation18] sm:$0xf]  ;;  %vm1188_vm8 = vcmask 195584  }
 0x3fe   : > { %v1069_v6 = vadd.s32 1, %v2852_v39  ;;  %vm1068_vm11 = vc.u32 %v2855_v41, %v2851_v37  ;;  %v1050_v1 = vsel %vm1044_vm9, %v1047_v5, %v1049_v13  ;;  %v1067_v54 = vadd.s32 %v2851_v37, %v2855_v41  ;;  %1553 = vmatprep.mubr.msk.f32.mxu1 %vm2207_vm7, %v2202_v28 }
 0x3ff   : > { %v1066_v43 = vmul.u32 %v1059_v35, %v1050_v1 }
 0x400   : > { %v1070_v14 = vsel %vm1068_vm11, %v1069_v6, %v2852_v39 }
 0x401   : > { %v1071_v33 = vadd.s32 %v1070_v14, %v1066_v43 }
 0x475   : > { %v1138_v62 = vpop.xlane.xlu1 %1137 }
 0x476   : > { %v2830_v0 = vsel %vm1139_vm4, %v1138_v62, %v1124_v45  ;;  %v1072_v45 = vadd.s32 536870912, %v1071_v33 }
 0x477   : > { %v1153_v2 = vsel %vm1147_vm5, %v2830_v0, 0.0  ;;  %vm1103_vm5 = vweird.f32 %v2824_v10 }
 0x478   : > { %1157 = vadd.xlane.f32.xlu0 %v1153_v2  ;;  %v1073_v46 = vshrl.u32 %v1072_v45, 30 }
 0x47a   : > { %v1074_v48 = vshll.u32 %v1073_v46, 30  ;;  %v1097_v18 = vsub.s32 4, %v1073_v46 }
 0x47c   : > { %v1075_v49 = vsub.s32 %v1071_v33, %v1074_v48  ;;  %v1098_v47 = vsel %vm1013_vm14, %v1097_v18, %v1073_v46  ;;  %v1777_v48 = vld [vmem:[%s459_s4] sm:$0xf]  ;;  %s2074_s4 = scalar_lea.vmem %s2898_s19, 64 }
 0x47d   : > { %v1100_v19 = vsel %vm1012_vm15, 0, %v1098_v47  ;;  %p2075_p2 = scmp.ne.s32.totalorder %s2898_s19, %s2074_s4  ;;  %p2082_p10 = scmp.lt.s32.totalorder %s2080_s11, %s2074_s4 }
 0x47e   : > { %v1077_v50 = vsub.s32 0, %v1075_v49  ;;  %v1104_v20 = vadd.s32 3, %v1100_v19 }
 0x47f   : > { %p2076_p7 = pnand %p2075_p2, %p3007_p13  ;;  %p2083_p5 = por %p2082_p10, %p2081_p8 }
 0x480   : > { %v1533_v56 = vmin.u32 %v1077_v50, %v1075_v49  ;;  %v1105_v23 = vand.u32 3, %v1104_v20  ;;  %v1778_v50 = vld [vmem:[%s468_s7] sm:$0xf] }
 0x481   : > { %p2077_p0 = pneg %p2076_p7 }
 0x482   : > { %v1079_v30 = vclz %v1533_v56  ;;  %vm1107_vm1 = vcmp.eq.s32.totalorder %v1105_v23, 0  ;;  %vm1110_vm3 = vcmp.eq.s32.totalorder %v1105_v23, 2  ;;  %vm1106_vm4 = vcmp.lt.s32.totalorder %v1105_v23, 2 }
 0x483   : > { %p2084_p11 = pnand %p2083_p5, %p2077_p0 }
 0x484   : > { %v1534_v52 = vadd.s32 4294967294, %v1079_v30 }
 0x486   : > { %vm1535_vm13 = vcmp.lt.s32.totalorder %v1534_v52, 0 }
 0x487   : > { %v1082_v59 = vsel %vm1535_vm13, 0, %v1534_v52 }
 0x488   : > { %v1087_v61 = vsub.s32 4294967266, %v1082_v59  ;;  %v1083_v60 = vsub.s32 32, %v1082_v59  ;;  %v1084_v32 = vshll.u32 %v1075_v49, %v1082_v59 }
 0x48a   : > { %v1088_v55 = vadd.s32 127, %v1087_v61  ;;  %v1085_v63 = vshrl.u32 %v1067_v54, %v1083_v60 }
 0x48c   : > { %v1089_v62 = vshll.u32 %v1088_v55, 23  ;;  %v1086_v7 = vor.u32 %v1085_v63, %v1084_v32 }
 0x48e   : > { %v1090_v2 = vor.u32 4788187, %v1089_v62  ;;  %v1093_v15 = vcvt.s32.f32 %v1086_v7 }
 0x490   : > { %v1091_v11 = vand.u32 2147483647, %v1090_v2 }
 0x492   : > { %v1094_v3 = vmul.f32 %v1093_v15, %v1091_v11 }
 0x494   : > { %v1095_v12 = vxor.u32 2147483648, %v1094_v3 }
 0x496   : > { %v1096_v16 = vsel %vm1013_vm14, %v1095_v12, %v1094_v3 }
 0x497   : > { %v1099_v17 = vsel %vm1012_vm15, %v2824_v10, %v1096_v16  ;;  %v1182_v10 = vld [vmem:[#allocation19] sm:$0xf] }
 0x498   : > { %1773 = vcosq.f32 %v1099_v17 }
 0x499   : > { %1775 = vsinq.f32 %v1099_v17 }
 0x4a2   : > { %v1774_v21 = vpop.eup %1773 }
 0x4a3   : > { %v1776_v22 = vpop.eup %1775  ;;  %v1111_v25 = vxor.u32 2147483648, %v1774_v21 }
 0x4a4   : > { %v1108_v24 = vxor.u32 2147483648, %v1776_v22 }
 0x4a5   : > { %v1112_v40 = vsel %vm1110_vm3, %v1111_v25, %v1776_v22 }
 0x4a6   : > { %v1109_v38 = vsel %vm1107_vm1, %v1774_v21, %v1108_v24 }
 0x4a7   : > { %v1113_v26 = vsel %vm1106_vm4, %v1109_v38, %v1112_v40 }
 0x4a8   : > { %v1114_v4 = vsel %vm1103_vm5, nan, %v1113_v26 }
 0x4a9   : > { %v1116_v34 = vmul.f32 %v1114_v4, %v1114_v4 }
 0x4ab   : > { %v1123_v8 = vmul.f32 %v2804_v44, %v1116_v34 }
 0x4ad   : > { %v1125_v31 = vadd.f32 %v1123_v8, %v2820_v51 }
 0x505   : > { %v1158_v29 = vpop.xlane.xlu0 %1157 }
 0x506   : > { %v1165_v35 = vsel %vm1159_vm6, %v1158_v29, %v2830_v0 }
 0x507   : > { %1175 = vrot.lane.b32.xlu1 %v1165_v35, %s2204_s3  ;;  %v1756_v37 = vpack.i.bf16 %v1125_v31, %v1165_v35 }
 0x509   : > { %1757 = vrot.lane.b32.xlu0 %v1756_v37, %s2203_s13 }
 0x50b   : > { %1177 = vrot.lane.b32.xlu1 %v1125_v31, %s2204_s3 }
 0x50d   : > { %1185 = vperm.xlu0 %1744, %v1182_v10  }
 0x579   : > { %v1176_v44 = vpop.permute.xlu1 %1175 }
 0x57b   : > { %v1758_v39 = vpop.permute.xlu0 %1757 }
 0x57c   : > { %v1760_v53 = vunpack.i.h.bf16 %v1758_v39  ;;  %v1759_v27 = vunpack.i.l.bf16 %v1758_v39 }
 0x57d   : > { %v1178_v0 = vpop.permute.xlu1 %1177 }
 0x57e   : > { %v1173_v51 = vsel %vm790_vm10, %v1759_v27, %v1760_v53  ;;  %v1179_v42 = vsel %vm798_vm12, %v1176_v44, %v1178_v0  ;;  %vm1274_vm10 = vcmask 7168  }
 0x57f   : > { %v1563_v41 = vpack.c.bf16 %v1173_v51, %v1165_v35 }
 0x581   : > { %1564 = vmatpush3.bf16.msra.mxu1 %v1563_v41 }
 0x582   : > { %1551 = vmatprep.subr.mxu1 %v2202_v28 }
 0x585   : > { %1552 = vmatpush3.msra.mxu1 %v1179_v42 }
 0x586   : > { %1554 = vmatmul.mubr.msk.f32.vlgmr.msra.gmra.mrb[0].mxu1 %vm1188_vm8, %v1181_v9 }
 0x58c   : > { %v1186_v5 = vpop.permute.xlu0 %1185 }
 0x659   : > { %v1258_v13 = vpop.f32.mrb[0].mxu1 }
 0x65a   : > { %v1259_v6 = vadd.f32 %v1258_v13, %v1186_v5  ;;  %v1555_v1 = vpop.f32.mrb[1].mxu1 }
 0x65c   : > { %1263 = vrot.lane.b32.xlu1 %v1259_v6, %s2208_s22 }
 0x6ce   : > { %v1264_v14 = vpop.permute.xlu1 %1263 }
 0x6cf   : > { %v1267_v28 = vsel %vm2814_vm2, %v1264_v14, 0.0  ;;  %v1266_v43 = vsel %vm2757_vm0, %v1264_v14, 0.0 }
 0x6d0   : > { %1272 = vrot.lane.b32.xlu1 %v1267_v28, %s2208_s22  ;;  %1270 = vrot.lane.b32.xlu0 %v1266_v43, %s2208_s22 }
 0x742   : > { %v1273_v33 = vpop.permute.xlu1 %1272  ;;  %v1271_v45 = vpop.permute.xlu0 %1270 }
 0x743   : > { %v1275_v46 = vsel %vm1274_vm10, %v1271_v45, %v1273_v33  ;;  %v1278_v49 = vadd.f32 %v1777_v48, %v1271_v45 }
 0x744   : > { %v1279_v56 = vadd.f32 %v1778_v50, %v1275_v46 }
 0x745   : > { %1282 = vrot.lane.b32.xlu0 %v1278_v49, %s2204_s3 }
 0x746   : > { %1284 = vrot.lane.b32.xlu1 %v1279_v56, %s2204_s3 }
 0x7b7   : > { %v1283_v58 = vpop.permute.xlu0 %1282 }
 0x7b8   : > { %v1285_v57 = vpop.permute.xlu1 %1284 }
 0x7b9   : > { %v1286_v30 = vsel %vm798_vm12, %v1283_v58, %v1285_v57 }
 0x7ba   : > { %1288 = vst [vmem:[%s541_s0] sm:$0xf] %v1286_v30 }
 0x7bb   : > { %2087 = shalt.err (!%p2084_p11)
}
 0x7bc   : > { %s2088_s6 = scalar_lea.hbm %s2896_s8, 64  ;;  %s2092_s3 = scalar_lea.hbm %s3006_s18, 128 }
 0x7bd   : > { %p2089_p12 = scmp.ne.s32.totalorder %s2896_s8, %s2088_s6  ;;  %p2093_p6 = scmp.lt.u32.totalorder %s2896_s8, %s3006_s18 }
 0x7be   : > { %p2094_p1 = scmp.lt.u32.totalorder %s2092_s3, %s2088_s6  ;;  %p2096_p2 = scmp.lt.u32.totalorder %s2088_s6, %s2896_s8 }
 0x7bf   : > { %p2090_p4 = pnand %p2089_p12, %p3007_p13 }
 0x7c0   : > { %p2095_p3 = por %p2094_p1, %p2093_p6 }
 0x7c1   : > { %p2091_p9 = pneg %p2090_p4 }
 0x7c2   : > { %p2097_p7 = por %p2096_p2, %p2095_p3 }
 0x7c4   : > { %p2098_p0 = pnand %p2097_p7, %p2091_p9 }
 0x7c6   : > { %2101 = shalt.err (!%p2098_p0)
}
 0x7c7   : > { %1617 = dma.vmem_to_hbm [thread:$0]  (%p3007_p13), %s2898_s19, 64, %s2896_s8, %s1290_s15  }
 0x7c8 PF: > { %s1316_s22 = sand.u32 1, %s2162_s27   ;;  %p3008_p8 = scmp.ne.s32.totalorder %s2987_s20, 0 }
 0x7c9   : > { %p3009_p10 = scmp.ge.s32.totalorder %s2182_s12, 2  ;;  %s1317_s5 = scalar_lea.sflag [#allocation6], %s1316_s22 }
 0x7cb   : > { %p1652_p5 = pnand %p3009_p10, %p3008_p8 }
 0x7cd   : > { %2157 = dma.done.wait (!%p1652_p5), %s1317_s5, 64  }
 0x7ce   : > { %2159 = vsyncadd (!%p1652_p5), %s1317_s5, 4294967232  ;;  %s38_s12 = sadd.s32 1, %s2182_s12   ;;  %s3010_s27 = smov %s2166_s28 }
 0x7cf   : > { %p35_p11 = scmp.ge.s32.totalorder %s38_s12, 4   ;;  %s3011_s28 = smov %s2170_s29 }
 0x7d0   : > { %s3012_s29 = smov %s2523_s17  ;;  %s3013_s0 = smov %s2178_s30 }
 0x7d1   : > { %s3014_s30 = smov %s3016_s24  ;;  %37 = sbr.rel (!%p35_p11) target bundleno = 27 (0x1b), region = 150 }
 0x7d8   :  { %1322 = vsyncpa [#allocation5], 1 }
 0x7d9   :  { %1324 = vsyncpa [#allocation5 + $0x1], 1 }
 0x7da   :  { %1325 = vsyncpa [#allocation8], 1 }
 0x7db   :  { %1327 = vsyncpa [#allocation8 + $0x1], 1 }
 0x7dc   :  { %1328 = vsyncpa [#allocation11], 1 }
 0x7dd   :  { %1329 = vsyncpa [#allocation14], 1 }
 0x7de   :  { %1330 = vsyncpa [#allocation17], 1 }
 0x7df   :  { %1331 = vsyncpa [#allocation20], 1 }
 0x7e0   :  { %1332 = vsyncpa [#allocation6], 1 }
 0x7e1   :  { %1334 = vsyncpa [#allocation6 + $0x1], 1 }

</bundles_post_ra>
